<compile_context>
chip_gen: v5e
topology: v5e:2x2
jax: 0.10.0
libtpu: 0.0.40
codegen_flags: <defaults>
</compile_context>

<pallas_src>
import jax
import jax.numpy as jnp
from jax import lax
from jax.experimental import pallas as pl
from jax.experimental.pallas import tpu as pltpu

# ---- problem sizes (small, consistent with the module's forward) ----
B = 2                        # samples processed in one kernel invocation
C, H, W = 8, 16, 16          # input sample channels / spatial
LATENT = 128                 # latent dim produced by the Encoder (fc hidden)
NUM_CLASSES = 8              # Decoder output classes
NUM_COPIES = 16              # module default num_copies
STEP = 10                    # module default step
NOISE_STD = 0.1              # module default noise_std
INV_LR = 0.01                # module default inv_lr

GRADZ_OFF = 128              # lane offset of the W^T block in the packed RHS
RHS_WIDTH = GRADZ_OFF + LATENT


def geodesic_kernel(pooled_ref, w_enc_ref, b_enc_ref, w_dec_ref, b_dec_ref,
                    rhs_ref, noise_ref, onehot_ref, out_ref):
    # ---------- Encoder tail: Linear(C, LATENT) + ReLU on pooled features ------
    z0 = jnp.dot(pooled_ref[...], w_enc_ref[...],
                 preferred_element_type=jnp.float32)          # (B, LATENT)
    z0 = jnp.maximum(z0 + b_enc_ref[...], 0.0)

    # ---------- noisy copy batch for ALL samples at once -----------------------
    # Rows [b*N, (b+1)*N) belong to sample b; row b*N carries zero noise (== z).
    noise = noise_ref[...]                                    # (B*N, LATENT)
    z_batch = jnp.concatenate(
        [z0[b:b + 1, :] + noise[b * NUM_COPIES:(b + 1) * NUM_COPIES, :]
         for b in range(B)], axis=0)                          # (B*N, LATENT)

    # Initial logits. Subsequent iterations stay in logit space:
    #   z_{t+1} = z_t - lr*grad_z  =>  logits_{t+1} = logits_t - lr*grad_logits@(W^T W)
    logits0 = jnp.dot(z_batch, w_dec_ref[...],
                      preferred_element_type=jnp.float32) + b_dec_ref[...]
    onehot = onehot_ref[...]                                  # (B*N, K)
    rhs = rhs_ref[...]                                        # (K, 256) packed

    def body(_, carry):
        logits, abs_acc = carry
        m = jnp.max(logits, axis=-1, keepdims=True)
        e = jnp.exp(logits - m)
        p = e / jnp.sum(e, axis=-1, keepdims=True)            # exact softmax
        g = p - onehot                                        # scales folded in RHS
        # One packed MXU push per step:
        #   lanes [0:K)        -> lr/N * g @ gram  (logits decrement)
        #   lanes [128:128+L)  -> 1/N  * g @ W^T   (grad_z)
        fused = jnp.dot(g, rhs, preferred_element_type=jnp.float32)
        logits = logits - fused[:, :NUM_CLASSES]
        abs_acc = abs_acc + jnp.abs(fused[:, GRADZ_OFF:])
        return logits, abs_acc

    _, abs_acc = lax.fori_loop(
        0, STEP, body,
        (logits0, jnp.zeros((B * NUM_COPIES, LATENT), jnp.float32)),
        unroll=True)

    # distance_t = lr * mean|grad_z_t| ; geodesic = mean over steps, per sample.
    scale = INV_LR / (STEP * NUM_COPIES * LATENT)
    for b in range(B):
        out_ref[0, b] = scale * jnp.sum(
            abs_acc[b * NUM_COPIES:(b + 1) * NUM_COPIES, :])


def geodesic_distance_loss(x, w_enc, b_enc, w_dec, b_dec, noise, labels):
    """x: (B, C, H, W). Returns (B,) geodesic distances, one per sample."""
    nb = x.shape[0]
    assert nb == B
    # Backbone: global average pool over spatial dims (cheap XLA reduce,
    # hoisted out of the latency-bound kernel).
    pooled = jnp.mean(x.reshape(nb, C, H * W).astype(jnp.float32), axis=2)  # (B, C)

    # Sample-invariant decoder pre-processing (consistency guaranteed here:
    # everything is derived from w_dec in this wrapper).
    w_dec_t = jnp.transpose(w_dec)                            # (K, LATENT)
    gram = jnp.dot(w_dec_t, w_dec)                            # (K, K)
    rhs = jnp.zeros((NUM_CLASSES, RHS_WIDTH), jnp.float32)
    rhs = rhs.at[:, :NUM_CLASSES].set(gram * (INV_LR / NUM_COPIES))
    rhs = rhs.at[:, GRADZ_OFF:].set(w_dec_t * (1.0 / NUM_COPIES))

    noise2d = noise.reshape(nb * NUM_COPIES, LATENT).astype(jnp.float32)
    onehot = jnp.repeat(
        jax.nn.one_hot(labels, NUM_CLASSES, dtype=jnp.float32),
        NUM_COPIES, axis=0)                                   # (B*N, K)

    vmem = pltpu.MemorySpace.VMEM
    out = pl.pallas_call(
        geodesic_kernel,
        out_shape=jax.ShapeDtypeStruct((1, nb), jnp.float32),
        in_specs=[
            pl.BlockSpec(memory_space=vmem),   # pooled   (B, C)
            pl.BlockSpec(memory_space=vmem),   # w_enc    (C, LATENT)
            pl.BlockSpec(memory_space=vmem),   # b_enc    (1, LATENT)
            pl.BlockSpec(memory_space=vmem),   # w_dec    (LATENT, K)
            pl.BlockSpec(memory_space=vmem),   # b_dec    (1, K)
            pl.BlockSpec(memory_space=vmem),   # rhs      (K, 256) packed
            pl.BlockSpec(memory_space=vmem),   # noise    (B*N, LATENT)
            pl.BlockSpec(memory_space=vmem),   # onehot   (B*N, K)
        ],
        out_specs=pl.BlockSpec(memory_space=pltpu.MemorySpace.SMEM),
    )(pooled, w_enc, b_enc, w_dec, b_dec, rhs, noise2d, onehot)
    return out[0]


def geodesic_ref(x, w_enc, b_enc, w_dec, b_dec, noise, labels):
    """Pure-JAX reference mirroring the module's z-space SGD loop."""
    nb = x.shape[0]
    pooled = jnp.mean(x.reshape(nb, C, H * W), axis=2)        # (B, C)
    z0 = jnp.maximum(pooled @ w_enc + b_enc, 0.0)             # (B, LATENT)
    z = z0[:, None, :] + noise                                # (B, N, LATENT)
    onehot = jax.nn.one_hot(labels, NUM_CLASSES, dtype=jnp.float32)[:, None, :]
    dists = []
    for _ in range(STEP):
        logits = z @ w_dec + b_dec                            # (B, N, K)
        p = jax.nn.softmax(logits, axis=-1)
        grad_logits = (p - onehot) / NUM_COPIES
        grad_z = grad_logits @ w_dec.T
        z_new = z - INV_LR * grad_z
        dists.append(jnp.mean(jnp.abs(z - z_new), axis=(1, 2)))
        z = z_new
    return jnp.mean(jnp.stack(dists, axis=0), axis=0)


if __name__ == "__main__":
    key = jax.random.PRNGKey(0)
    kx, ke, kbe, kd, kbd, kn = jax.random.split(key, 6)

    # deterministic synthetic parameters (shapes implied by the module's __init__)
    x = jax.random.normal(kx, (B, C, H, W), dtype=jnp.float32)
    w_enc = jax.random.normal(ke, (C, LATENT), dtype=jnp.float32) * 0.1
    b_enc = jax.random.normal(kbe, (1, LATENT), dtype=jnp.float32) * 0.01
    w_dec = jax.random.normal(kd, (LATENT, NUM_CLASSES), dtype=jnp.float32) * 0.1
    b_dec = jax.random.normal(kbd, (1, NUM_CLASSES), dtype=jnp.float32) * 0.01

    # per-sample noise copies: row 0 is the un-perturbed latent (z itself),
    # rows 1..N-1 are z + randn * noise_std.
    # TODO(synk): torch.randn_like RNG stream replaced by jax.random (not bit-identical).
    noise = NOISE_STD * jax.random.normal(kn, (B, NUM_COPIES, LATENT), jnp.float32)
    noise = noise.at[:, 0, :].set(0.0)

    labels = jnp.array([3, 5], dtype=jnp.int32)               # one label per sample

    loss = geodesic_distance_loss(x, w_enc, b_enc, w_dec, b_dec, noise, labels)
    jax.block_until_ready(loss)
    assert loss.shape == (B,) and bool(jnp.all(jnp.isfinite(loss)))

    ref = geodesic_ref(x, w_enc, b_enc, w_dec, b_dec, noise, labels)
    assert jnp.allclose(loss, ref, rtol=1e-2, atol=1e-6), (loss, ref)

    print("KERNEL_OK")
</pallas_src>

<mosaic_0001>
module attributes {stable_mosaic.version = 11 : i64} {
  func.func @geodesic_kernel(%arg0: memref<2x8xf32, #tpu.memory_space<vmem>>, %arg1: memref<8x128xf32, #tpu.memory_space<vmem>>, %arg2: memref<1x128xf32, #tpu.memory_space<vmem>>, %arg3: memref<128x8xf32, #tpu.memory_space<vmem>>, %arg4: memref<1x8xf32, #tpu.memory_space<vmem>>, %arg5: memref<8x256xf32, #tpu.memory_space<vmem>>, %arg6: memref<32x128xf32, #tpu.memory_space<vmem>>, %arg7: memref<32x8xf32, #tpu.memory_space<vmem>>, %arg8: memref<1x2xf32, #tpu.memory_space<smem>>) attributes {dimension_semantics = [], scalar_prefetch = 0 : i64, scratch_operands = 0 : i64, tpu.core_type = #tpu.core_type<tc>} {
    %c0 = arith.constant 0 : index
    %c0_0 = arith.constant 0 : index
    %0 = vector.load %arg0[%c0, %c0_0] : memref<2x8xf32, #tpu.memory_space<vmem>>, vector<2x8xf32>
    %c0_1 = arith.constant 0 : index
    %c0_2 = arith.constant 0 : index
    %1 = vector.load %arg1[%c0_1, %c0_2] : memref<8x128xf32, #tpu.memory_space<vmem>>, vector<8x128xf32>
    %cst = arith.constant dense<0.000000e+00> : vector<2x128xf32>
    %2 = tpu.matmul %0, %1, %cst {dimension_numbers = #tpu.dot_dimension_numbers<[1], [0], [0], [1], [0, 0, 1, 1], [], []>} : vector<2x8xf32>, vector<8x128xf32>, vector<2x128xf32> -> vector<2x128xf32>
    %c0_3 = arith.constant 0 : index
    %c0_4 = arith.constant 0 : index
    %3 = vector.load %arg2[%c0_3, %c0_4] : memref<1x128xf32, #tpu.memory_space<vmem>>, vector<1x128xf32>
    %4 = vector.broadcast %3 : vector<1x128xf32> to vector<2x128xf32>
    %5 = arith.addf %2, %4 : vector<2x128xf32>
    %cst_5 = arith.constant 0.000000e+00 : f32
    %6 = vector.broadcast %cst_5 : f32 to vector<2x128xf32>
    %7 = arith.maximumf %5, %6 : vector<2x128xf32>
    %c0_6 = arith.constant 0 : index
    %c0_7 = arith.constant 0 : index
    %8 = vector.load %arg6[%c0_6, %c0_7] : memref<32x128xf32, #tpu.memory_space<vmem>>, vector<32x128xf32>
    %9 = vector.extract_strided_slice %7 {offsets = [0, 0], sizes = [1, 128], strides = [1, 1]} : vector<2x128xf32> to vector<1x128xf32>
    %10 = vector.extract_strided_slice %8 {offsets = [0, 0], sizes = [16, 128], strides = [1, 1]} : vector<32x128xf32> to vector<16x128xf32>
    %11 = vector.broadcast %9 : vector<1x128xf32> to vector<16x128xf32>
    %12 = arith.addf %11, %10 : vector<16x128xf32>
    %13 = vector.extract_strided_slice %7 {offsets = [1, 0], sizes = [1, 128], strides = [1, 1]} : vector<2x128xf32> to vector<1x128xf32>
    %14 = vector.extract_strided_slice %8 {offsets = [16, 0], sizes = [16, 128], strides = [1, 1]} : vector<32x128xf32> to vector<16x128xf32>
    %15 = vector.broadcast %13 : vector<1x128xf32> to vector<16x128xf32>
    %16 = arith.addf %15, %14 : vector<16x128xf32>
    %17 = tpu.concatenate %12, %16 in 0 : vector<16x128xf32>, vector<16x128xf32> -> vector<32x128xf32>
    %c0_8 = arith.constant 0 : index
    %c0_9 = arith.constant 0 : index
    %18 = vector.load %arg3[%c0_8, %c0_9] : memref<128x8xf32, #tpu.memory_space<vmem>>, vector<128x8xf32>
    %cst_10 = arith.constant dense<0.000000e+00> : vector<32x8xf32>
    %19 = tpu.matmul %17, %18, %cst_10 {dimension_numbers = #tpu.dot_dimension_numbers<[1], [0], [0], [1], [0, 0, 1, 1], [], []>} : vector<32x128xf32>, vector<128x8xf32>, vector<32x8xf32> -> vector<32x8xf32>
    %c0_11 = arith.constant 0 : index
    %c0_12 = arith.constant 0 : index
    %20 = vector.load %arg4[%c0_11, %c0_12] : memref<1x8xf32, #tpu.memory_space<vmem>>, vector<1x8xf32>
    %21 = vector.broadcast %20 : vector<1x8xf32> to vector<32x8xf32>
    %22 = arith.addf %19, %21 : vector<32x8xf32>
    %c0_13 = arith.constant 0 : index
    %c0_14 = arith.constant 0 : index
    %23 = vector.load %arg7[%c0_13, %c0_14] : memref<32x8xf32, #tpu.memory_space<vmem>>, vector<32x8xf32>
    %c0_15 = arith.constant 0 : index
    %c0_16 = arith.constant 0 : index
    %24 = vector.load %arg5[%c0_15, %c0_16] : memref<8x256xf32, #tpu.memory_space<vmem>>, vector<8x256xf32>
    %cst_17 = arith.constant 0.000000e+00 : f32
    %25 = vector.broadcast %cst_17 : f32 to vector<32x128xf32>
    %c0_i32 = arith.constant 0 : i32
    %cst_18 = arith.constant dense<0xFF800000> : vector<32xf32>
    %26 = vector.multi_reduction <maximumf>, %22, %cst_18 [1] : vector<32x8xf32> to vector<32xf32>
    %27 = vector.shape_cast %26 : vector<32xf32> to vector<32x1xf32>
    %28 = vector.broadcast %27 : vector<32x1xf32> to vector<32x8xf32>
    %29 = arith.subf %22, %28 : vector<32x8xf32>
    %30 = math.exp %29 : vector<32x8xf32>
    %cst_19 = arith.constant dense<0.000000e+00> : vector<32xf32>
    %31 = vector.multi_reduction <add>, %30, %cst_19 [1] : vector<32x8xf32> to vector<32xf32>
    %32 = vector.shape_cast %31 : vector<32xf32> to vector<32x1xf32>
    %33 = vector.broadcast %32 : vector<32x1xf32> to vector<32x8xf32>
    %34 = arith.divf %30, %33 : vector<32x8xf32>
    %35 = arith.subf %34, %23 : vector<32x8xf32>
    %cst_20 = arith.constant dense<0.000000e+00> : vector<32x256xf32>
    %36 = tpu.matmul %35, %24, %cst_20 {dimension_numbers = #tpu.dot_dimension_numbers<[1], [0], [0], [1], [0, 0, 1, 1], [], []>} : vector<32x8xf32>, vector<8x256xf32>, vector<32x256xf32> -> vector<32x256xf32>
    %37 = vector.extract_strided_slice %36 {offsets = [0, 0], sizes = [32, 8], strides = [1, 1]} : vector<32x256xf32> to vector<32x8xf32>
    %38 = arith.subf %22, %37 : vector<32x8xf32>
    %39 = vector.extract_strided_slice %36 {offsets = [0, 128], sizes = [32, 128], strides = [1, 1]} : vector<32x256xf32> to vector<32x128xf32>
    %40 = math.absf %39 : vector<32x128xf32>
    %41 = arith.addf %25, %40 : vector<32x128xf32>
    %c1_i32 = arith.constant 1 : i32
    %cst_21 = arith.constant dense<0xFF800000> : vector<32xf32>
    %42 = vector.multi_reduction <maximumf>, %38, %cst_21 [1] : vector<32x8xf32> to vector<32xf32>
    %43 = vector.shape_cast %42 : vector<32xf32> to vector<32x1xf32>
    %44 = vector.broadcast %43 : vector<32x1xf32> to vector<32x8xf32>
    %45 = arith.subf %38, %44 : vector<32x8xf32>
    %46 = math.exp %45 : vector<32x8xf32>
    %cst_22 = arith.constant dense<0.000000e+00> : vector<32xf32>
    %47 = vector.multi_reduction <add>, %46, %cst_22 [1] : vector<32x8xf32> to vector<32xf32>
    %48 = vector.shape_cast %47 : vector<32xf32> to vector<32x1xf32>
    %49 = vector.broadcast %48 : vector<32x1xf32> to vector<32x8xf32>
    %50 = arith.divf %46, %49 : vector<32x8xf32>
    %51 = arith.subf %50, %23 : vector<32x8xf32>
    %cst_23 = arith.constant dense<0.000000e+00> : vector<32x256xf32>
    %52 = tpu.matmul %51, %24, %cst_23 {dimension_numbers = #tpu.dot_dimension_numbers<[1], [0], [0], [1], [0, 0, 1, 1], [], []>} : vector<32x8xf32>, vector<8x256xf32>, vector<32x256xf32> -> vector<32x256xf32>
    %53 = vector.extract_strided_slice %52 {offsets = [0, 0], sizes = [32, 8], strides = [1, 1]} : vector<32x256xf32> to vector<32x8xf32>
    %54 = arith.subf %38, %53 : vector<32x8xf32>
    %55 = vector.extract_strided_slice %52 {offsets = [0, 128], sizes = [32, 128], strides = [1, 1]} : vector<32x256xf32> to vector<32x128xf32>
    %56 = math.absf %55 : vector<32x128xf32>
    %57 = arith.addf %41, %56 : vector<32x128xf32>
    %c2_i32 = arith.constant 2 : i32
    %cst_24 = arith.constant dense<0xFF800000> : vector<32xf32>
    %58 = vector.multi_reduction <maximumf>, %54, %cst_24 [1] : vector<32x8xf32> to vector<32xf32>
    %59 = vector.shape_cast %58 : vector<32xf32> to vector<32x1xf32>
    %60 = vector.broadcast %59 : vector<32x1xf32> to vector<32x8xf32>
    %61 = arith.subf %54, %60 : vector<32x8xf32>
    %62 = math.exp %61 : vector<32x8xf32>
    %cst_25 = arith.constant dense<0.000000e+00> : vector<32xf32>
    %63 = vector.multi_reduction <add>, %62, %cst_25 [1] : vector<32x8xf32> to vector<32xf32>
    %64 = vector.shape_cast %63 : vector<32xf32> to vector<32x1xf32>
    %65 = vector.broadcast %64 : vector<32x1xf32> to vector<32x8xf32>
    %66 = arith.divf %62, %65 : vector<32x8xf32>
    %67 = arith.subf %66, %23 : vector<32x8xf32>
    %cst_26 = arith.constant dense<0.000000e+00> : vector<32x256xf32>
    %68 = tpu.matmul %67, %24, %cst_26 {dimension_numbers = #tpu.dot_dimension_numbers<[1], [0], [0], [1], [0, 0, 1, 1], [], []>} : vector<32x8xf32>, vector<8x256xf32>, vector<32x256xf32> -> vector<32x256xf32>
    %69 = vector.extract_strided_slice %68 {offsets = [0, 0], sizes = [32, 8], strides = [1, 1]} : vector<32x256xf32> to vector<32x8xf32>
    %70 = arith.subf %54, %69 : vector<32x8xf32>
    %71 = vector.extract_strided_slice %68 {offsets = [0, 128], sizes = [32, 128], strides = [1, 1]} : vector<32x256xf32> to vector<32x128xf32>
    %72 = math.absf %71 : vector<32x128xf32>
    %73 = arith.addf %57, %72 : vector<32x128xf32>
    %c3_i32 = arith.constant 3 : i32
    %cst_27 = arith.constant dense<0xFF800000> : vector<32xf32>
    %74 = vector.multi_reduction <maximumf>, %70, %cst_27 [1] : vector<32x8xf32> to vector<32xf32>
    %75 = vector.shape_cast %74 : vector<32xf32> to vector<32x1xf32>
    %76 = vector.broadcast %75 : vector<32x1xf32> to vector<32x8xf32>
    %77 = arith.subf %70, %76 : vector<32x8xf32>
    %78 = math.exp %77 : vector<32x8xf32>
    %cst_28 = arith.constant dense<0.000000e+00> : vector<32xf32>
    %79 = vector.multi_reduction <add>, %78, %cst_28 [1] : vector<32x8xf32> to vector<32xf32>
    %80 = vector.shape_cast %79 : vector<32xf32> to vector<32x1xf32>
    %81 = vector.broadcast %80 : vector<32x1xf32> to vector<32x8xf32>
    %82 = arith.divf %78, %81 : vector<32x8xf32>
    %83 = arith.subf %82, %23 : vector<32x8xf32>
    %cst_29 = arith.constant dense<0.000000e+00> : vector<32x256xf32>
    %84 = tpu.matmul %83, %24, %cst_29 {dimension_numbers = #tpu.dot_dimension_numbers<[1], [0], [0], [1], [0, 0, 1, 1], [], []>} : vector<32x8xf32>, vector<8x256xf32>, vector<32x256xf32> -> vector<32x256xf32>
    %85 = vector.extract_strided_slice %84 {offsets = [0, 0], sizes = [32, 8], strides = [1, 1]} : vector<32x256xf32> to vector<32x8xf32>
    %86 = arith.subf %70, %85 : vector<32x8xf32>
    %87 = vector.extract_strided_slice %84 {offsets = [0, 128], sizes = [32, 128], strides = [1, 1]} : vector<32x256xf32> to vector<32x128xf32>
    %88 = math.absf %87 : vector<32x128xf32>
    %89 = arith.addf %73, %88 : vector<32x128xf32>
    %c4_i32 = arith.constant 4 : i32
    %cst_30 = arith.constant dense<0xFF800000> : vector<32xf32>
    %90 = vector.multi_reduction <maximumf>, %86, %cst_30 [1] : vector<32x8xf32> to vector<32xf32>
    %91 = vector.shape_cast %90 : vector<32xf32> to vector<32x1xf32>
    %92 = vector.broadcast %91 : vector<32x1xf32> to vector<32x8xf32>
    %93 = arith.subf %86, %92 : vector<32x8xf32>
    %94 = math.exp %93 : vector<32x8xf32>
    %cst_31 = arith.constant dense<0.000000e+00> : vector<32xf32>
    %95 = vector.multi_reduction <add>, %94, %cst_31 [1] : vector<32x8xf32> to vector<32xf32>
    %96 = vector.shape_cast %95 : vector<32xf32> to vector<32x1xf32>
    %97 = vector.broadcast %96 : vector<32x1xf32> to vector<32x8xf32>
    %98 = arith.divf %94, %97 : vector<32x8xf32>
    %99 = arith.subf %98, %23 : vector<32x8xf32>
    %cst_32 = arith.constant dense<0.000000e+00> : vector<32x256xf32>
    %100 = tpu.matmul %99, %24, %cst_32 {dimension_numbers = #tpu.dot_dimension_numbers<[1], [0], [0], [1], [0, 0, 1, 1], [], []>} : vector<32x8xf32>, vector<8x256xf32>, vector<32x256xf32> -> vector<32x256xf32>
    %101 = vector.extract_strided_slice %100 {offsets = [0, 0], sizes = [32, 8], strides = [1, 1]} : vector<32x256xf32> to vector<32x8xf32>
    %102 = arith.subf %86, %101 : vector<32x8xf32>
    %103 = vector.extract_strided_slice %100 {offsets = [0, 128], sizes = [32, 128], strides = [1, 1]} : vector<32x256xf32> to vector<32x128xf32>
    %104 = math.absf %103 : vector<32x128xf32>
    %105 = arith.addf %89, %104 : vector<32x128xf32>
    %c5_i32 = arith.constant 5 : i32
    %cst_33 = arith.constant dense<0xFF800000> : vector<32xf32>
    %106 = vector.multi_reduction <maximumf>, %102, %cst_33 [1] : vector<32x8xf32> to vector<32xf32>
    %107 = vector.shape_cast %106 : vector<32xf32> to vector<32x1xf32>
    %108 = vector.broadcast %107 : vector<32x1xf32> to vector<32x8xf32>
    %109 = arith.subf %102, %108 : vector<32x8xf32>
    %110 = math.exp %109 : vector<32x8xf32>
    %cst_34 = arith.constant dense<0.000000e+00> : vector<32xf32>
    %111 = vector.multi_reduction <add>, %110, %cst_34 [1] : vector<32x8xf32> to vector<32xf32>
    %112 = vector.shape_cast %111 : vector<32xf32> to vector<32x1xf32>
    %113 = vector.broadcast %112 : vector<32x1xf32> to vector<32x8xf32>
    %114 = arith.divf %110, %113 : vector<32x8xf32>
    %115 = arith.subf %114, %23 : vector<32x8xf32>
    %cst_35 = arith.constant dense<0.000000e+00> : vector<32x256xf32>
    %116 = tpu.matmul %115, %24, %cst_35 {dimension_numbers = #tpu.dot_dimension_numbers<[1], [0], [0], [1], [0, 0, 1, 1], [], []>} : vector<32x8xf32>, vector<8x256xf32>, vector<32x256xf32> -> vector<32x256xf32>
    %117 = vector.extract_strided_slice %116 {offsets = [0, 0], sizes = [32, 8], strides = [1, 1]} : vector<32x256xf32> to vector<32x8xf32>
    %118 = arith.subf %102, %117 : vector<32x8xf32>
    %119 = vector.extract_strided_slice %116 {offsets = [0, 128], sizes = [32, 128], strides = [1, 1]} : vector<32x256xf32> to vector<32x128xf32>
    %120 = math.absf %119 : vector<32x128xf32>
    %121 = arith.addf %105, %120 : vector<32x128xf32>
    %c6_i32 = arith.constant 6 : i32
    %cst_36 = arith.constant dense<0xFF800000> : vector<32xf32>
    %122 = vector.multi_reduction <maximumf>, %118, %cst_36 [1] : vector<32x8xf32> to vector<32xf32>
    %123 = vector.shape_cast %122 : vector<32xf32> to vector<32x1xf32>
    %124 = vector.broadcast %123 : vector<32x1xf32> to vector<32x8xf32>
    %125 = arith.subf %118, %124 : vector<32x8xf32>
    %126 = math.exp %125 : vector<32x8xf32>
    %cst_37 = arith.constant dense<0.000000e+00> : vector<32xf32>
    %127 = vector.multi_reduction <add>, %126, %cst_37 [1] : vector<32x8xf32> to vector<32xf32>
    %128 = vector.shape_cast %127 : vector<32xf32> to vector<32x1xf32>
    %129 = vector.broadcast %128 : vector<32x1xf32> to vector<32x8xf32>
    %130 = arith.divf %126, %129 : vector<32x8xf32>
    %131 = arith.subf %130, %23 : vector<32x8xf32>
    %cst_38 = arith.constant dense<0.000000e+00> : vector<32x256xf32>
    %132 = tpu.matmul %131, %24, %cst_38 {dimension_numbers = #tpu.dot_dimension_numbers<[1], [0], [0], [1], [0, 0, 1, 1], [], []>} : vector<32x8xf32>, vector<8x256xf32>, vector<32x256xf32> -> vector<32x256xf32>
    %133 = vector.extract_strided_slice %132 {offsets = [0, 0], sizes = [32, 8], strides = [1, 1]} : vector<32x256xf32> to vector<32x8xf32>
    %134 = arith.subf %118, %133 : vector<32x8xf32>
    %135 = vector.extract_strided_slice %132 {offsets = [0, 128], sizes = [32, 128], strides = [1, 1]} : vector<32x256xf32> to vector<32x128xf32>
    %136 = math.absf %135 : vector<32x128xf32>
    %137 = arith.addf %121, %136 : vector<32x128xf32>
    %c7_i32 = arith.constant 7 : i32
    %cst_39 = arith.constant dense<0xFF800000> : vector<32xf32>
    %138 = vector.multi_reduction <maximumf>, %134, %cst_39 [1] : vector<32x8xf32> to vector<32xf32>
    %139 = vector.shape_cast %138 : vector<32xf32> to vector<32x1xf32>
    %140 = vector.broadcast %139 : vector<32x1xf32> to vector<32x8xf32>
    %141 = arith.subf %134, %140 : vector<32x8xf32>
    %142 = math.exp %141 : vector<32x8xf32>
    %cst_40 = arith.constant dense<0.000000e+00> : vector<32xf32>
    %143 = vector.multi_reduction <add>, %142, %cst_40 [1] : vector<32x8xf32> to vector<32xf32>
    %144 = vector.shape_cast %143 : vector<32xf32> to vector<32x1xf32>
    %145 = vector.broadcast %144 : vector<32x1xf32> to vector<32x8xf32>
    %146 = arith.divf %142, %145 : vector<32x8xf32>
    %147 = arith.subf %146, %23 : vector<32x8xf32>
    %cst_41 = arith.constant dense<0.000000e+00> : vector<32x256xf32>
    %148 = tpu.matmul %147, %24, %cst_41 {dimension_numbers = #tpu.dot_dimension_numbers<[1], [0], [0], [1], [0, 0, 1, 1], [], []>} : vector<32x8xf32>, vector<8x256xf32>, vector<32x256xf32> -> vector<32x256xf32>
    %149 = vector.extract_strided_slice %148 {offsets = [0, 0], sizes = [32, 8], strides = [1, 1]} : vector<32x256xf32> to vector<32x8xf32>
    %150 = arith.subf %134, %149 : vector<32x8xf32>
    %151 = vector.extract_strided_slice %148 {offsets = [0, 128], sizes = [32, 128], strides = [1, 1]} : vector<32x256xf32> to vector<32x128xf32>
    %152 = math.absf %151 : vector<32x128xf32>
    %153 = arith.addf %137, %152 : vector<32x128xf32>
    %c8_i32 = arith.constant 8 : i32
    %cst_42 = arith.constant dense<0xFF800000> : vector<32xf32>
    %154 = vector.multi_reduction <maximumf>, %150, %cst_42 [1] : vector<32x8xf32> to vector<32xf32>
    %155 = vector.shape_cast %154 : vector<32xf32> to vector<32x1xf32>
    %156 = vector.broadcast %155 : vector<32x1xf32> to vector<32x8xf32>
    %157 = arith.subf %150, %156 : vector<32x8xf32>
    %158 = math.exp %157 : vector<32x8xf32>
    %cst_43 = arith.constant dense<0.000000e+00> : vector<32xf32>
    %159 = vector.multi_reduction <add>, %158, %cst_43 [1] : vector<32x8xf32> to vector<32xf32>
    %160 = vector.shape_cast %159 : vector<32xf32> to vector<32x1xf32>
    %161 = vector.broadcast %160 : vector<32x1xf32> to vector<32x8xf32>
    %162 = arith.divf %158, %161 : vector<32x8xf32>
    %163 = arith.subf %162, %23 : vector<32x8xf32>
    %cst_44 = arith.constant dense<0.000000e+00> : vector<32x256xf32>
    %164 = tpu.matmul %163, %24, %cst_44 {dimension_numbers = #tpu.dot_dimension_numbers<[1], [0], [0], [1], [0, 0, 1, 1], [], []>} : vector<32x8xf32>, vector<8x256xf32>, vector<32x256xf32> -> vector<32x256xf32>
    %165 = vector.extract_strided_slice %164 {offsets = [0, 0], sizes = [32, 8], strides = [1, 1]} : vector<32x256xf32> to vector<32x8xf32>
    %166 = arith.subf %150, %165 : vector<32x8xf32>
    %167 = vector.extract_strided_slice %164 {offsets = [0, 128], sizes = [32, 128], strides = [1, 1]} : vector<32x256xf32> to vector<32x128xf32>
    %168 = math.absf %167 : vector<32x128xf32>
    %169 = arith.addf %153, %168 : vector<32x128xf32>
    %c9_i32 = arith.constant 9 : i32
    %cst_45 = arith.constant dense<0xFF800000> : vector<32xf32>
    %170 = vector.multi_reduction <maximumf>, %166, %cst_45 [1] : vector<32x8xf32> to vector<32xf32>
    %171 = vector.shape_cast %170 : vector<32xf32> to vector<32x1xf32>
    %172 = vector.broadcast %171 : vector<32x1xf32> to vector<32x8xf32>
    %173 = arith.subf %166, %172 : vector<32x8xf32>
    %174 = math.exp %173 : vector<32x8xf32>
    %cst_46 = arith.constant dense<0.000000e+00> : vector<32xf32>
    %175 = vector.multi_reduction <add>, %174, %cst_46 [1] : vector<32x8xf32> to vector<32xf32>
    %176 = vector.shape_cast %175 : vector<32xf32> to vector<32x1xf32>
    %177 = vector.broadcast %176 : vector<32x1xf32> to vector<32x8xf32>
    %178 = arith.divf %174, %177 : vector<32x8xf32>
    %179 = arith.subf %178, %23 : vector<32x8xf32>
    %cst_47 = arith.constant dense<0.000000e+00> : vector<32x256xf32>
    %180 = tpu.matmul %179, %24, %cst_47 {dimension_numbers = #tpu.dot_dimension_numbers<[1], [0], [0], [1], [0, 0, 1, 1], [], []>} : vector<32x8xf32>, vector<8x256xf32>, vector<32x256xf32> -> vector<32x256xf32>
    %181 = vector.extract_strided_slice %180 {offsets = [0, 0], sizes = [32, 8], strides = [1, 1]} : vector<32x256xf32> to vector<32x8xf32>
    %182 = arith.subf %166, %181 : vector<32x8xf32>
    %183 = vector.extract_strided_slice %180 {offsets = [0, 128], sizes = [32, 128], strides = [1, 1]} : vector<32x256xf32> to vector<32x128xf32>
    %184 = math.absf %183 : vector<32x128xf32>
    %185 = arith.addf %169, %184 : vector<32x128xf32>
    %186 = vector.extract_strided_slice %185 {offsets = [0, 0], sizes = [16, 128], strides = [1, 1]} : vector<32x128xf32> to vector<16x128xf32>
    %187 = vector.shape_cast %186 : vector<16x128xf32> to vector<1x16x128xf32>
    %cst_48 = arith.constant dense<0.000000e+00> : vector<1xf32>
    %188 = vector.multi_reduction <add>, %187, %cst_48 [1, 2] : vector<1x16x128xf32> to vector<1xf32>
    %189 = vector.shape_cast %188 : vector<1xf32> to vector<1x1x1xf32>
    %190 = vector.extract %189[0, 0, 0] : f32 from vector<1x1x1xf32>
    %cst_49 = arith.constant 4.88281273E-7 : f32
    %191 = arith.mulf %cst_49, %190 : f32
    %c0_50 = arith.constant 0 : index
    %c0_51 = arith.constant 0 : index
    %192 = memref.load %arg8[%c0_50, %c0_51] : memref<1x2xf32, #tpu.memory_space<smem>>
    memref.store %191, %arg8[%c0_50, %c0_51] : memref<1x2xf32, #tpu.memory_space<smem>>
    %193 = vector.extract_strided_slice %185 {offsets = [16, 0], sizes = [16, 128], strides = [1, 1]} : vector<32x128xf32> to vector<16x128xf32>
    %194 = vector.shape_cast %193 : vector<16x128xf32> to vector<1x16x128xf32>
    %cst_52 = arith.constant dense<0.000000e+00> : vector<1xf32>
    %195 = vector.multi_reduction <add>, %194, %cst_52 [1, 2] : vector<1x16x128xf32> to vector<1xf32>
    %196 = vector.shape_cast %195 : vector<1xf32> to vector<1x1x1xf32>
    %197 = vector.extract %196[0, 0, 0] : f32 from vector<1x1x1xf32>
    %cst_53 = arith.constant 4.88281273E-7 : f32
    %198 = arith.mulf %cst_53, %197 : f32
    %c0_54 = arith.constant 0 : index
    %c1 = arith.constant 1 : index
    %199 = memref.load %arg8[%c0_54, %c1] : memref<1x2xf32, #tpu.memory_space<smem>>
    memref.store %198, %arg8[%c0_54, %c1] : memref<1x2xf32, #tpu.memory_space<smem>>
    return
  }
}

</mosaic_0001>

<bundles_post_ra>
// kernel: tpu_custom_call.1
= control target key start
LH: loop header
LB: loop body
LE: loop exit
PB: predicated region body
PF: predicated region fallthrough
CT: control target
= control target key end

     0   :  { %vm36_vm0 = vcmask 64512   ;;  %s2937_s0 = inlined_call_operand.vmem [shape: f32[2,8], index: 0, kind: input, shape index: {}]   ;;  %s2938_s1 = inlined_call_operand.vmem [shape: f32[8,128], index: 1, kind: input, shape index: {}]   ;;  %s2939_s2 = inlined_call_operand.vmem [shape: f32[1,128], index: 2, kind: input, shape index: {}]   ;;  %s2940_s3 = inlined_call_operand.vmem [shape: f32[128,8], index: 3, kind: input, shape index: {}]   ;;  %s2941_s4 = inlined_call_operand.vmem [shape: f32[1,8], index: 4, kind: input, shape index: {}]   ;;  %s2942_s5 = inlined_call_operand.vmem [shape: f32[8,256], index: 5, kind: input, shape index: {}]   ;;  %s2943_s6 = inlined_call_operand.vmem [shape: f32[32,128], index: 6, kind: input, shape index: {}]   ;;  %s2944_s7 = inlined_call_operand.vmem [shape: f32[32,8], index: 7, kind: input, shape index: {}]   ;;  %s2945_s8 = inlined_call_operand.hbm [shape: f32[1,2], index: 8, kind: output, shape index: {}]  }
   0x1   :  { %v31_v0 = vld [vmem:[%s2938_s1] sm:$0xff]  ;;  %v86_v2 = vld [vmem:[%s2940_s3 + $0x78] sm:$0xff]  ;;  %v85_v3 = vld [vmem:[%s2940_s3 + $0x70] sm:$0xff] }
   0x2   :  { %v30_v1 = vld [vmem:[%s2937_s0] sm:$0x3]  ;;  %55 = vmatpush.msra.mxu0 %v31_v0  ;;  %91 = vmatpush.msra.mxu1 %v86_v2  ;;  %v84_v4 = vld [vmem:[%s2940_s3 + $0x68] sm:$0xff] }
   0x3   :  { %1954 = vmatmul.msk.f32.vlgmr.msra.gmra.mxu0 %vm36_vm0, %v30_v1  ;;  %v83_v5 = vld [vmem:[%s2940_s3 + $0x60] sm:$0xff] }
   0x4   :  { %92 = vmatpush.msra.mxu1 %v85_v3 }
   0x6   :  { %93 = vmatpush.msra.mxu1 %v84_v4 }
   0x7   :  { %13 = vsyncpa [#allocation3], 0  ;;  %v82_v6 = vld [vmem:[%s2940_s3 + $0x58] sm:$0xff]  ;;  %v81_v7 = vld [vmem:[%s2940_s3 + $0x50] sm:$0xff]  ;;  %s1944_s29 = sshll.u32 %s2945_s8, 4  ;;  %s2224_s10 = smov [#allocation2]   ;;  %s1945_s29 = int_to_ptr.hbm [resolvable:$true] %s1944_s29 }
   0x8   :  { %94 = vmatpush.msra.mxu1 %v83_v5  ;;  %v80_v8 = vld [vmem:[%s2940_s3 + $0x48] sm:$0xff]  ;;  %v79_v9 = vld [vmem:[%s2940_s3 + $0x40] sm:$0xff]  ;;  %v78_v10 = vld [vmem:[%s2940_s3 + $0x38] sm:$0xff] }
   0x9   :  { %v77_v11 = vld [vmem:[%s2940_s3 + $0x30] sm:$0xff]  ;;  %v76_v12 = vld [vmem:[%s2940_s3 + $0x28] sm:$0xff]  ;;  %v75_v13 = vld [vmem:[%s2940_s3 + $0x20] sm:$0xff] }
   0xa   :  { %95 = vmatpush.msra.mxu1 %v82_v6  ;;  %v74_v14 = vld [vmem:[%s2940_s3 + $0x18] sm:$0xff]  ;;  %v73_v15 = vld [vmem:[%s2940_s3 + $0x10] sm:$0xff]  ;;  %v72_v16 = vld [vmem:[%s2940_s3 + $0x8] sm:$0xff] }
   0xb   :  { %v71_v17 = vld [vmem:[%s2940_s3] sm:$0xff]  ;;  %v62_v25 = vld [vmem:[%s2943_s6 + $0x8] sm:$0xff]  ;;  %v63_v28 = vld [vmem:[%s2943_s6 + $0x10] sm:$0xff] }
   0xc   :  { %96 = vmatpush.msra.mxu1 %v81_v7  ;;  %v2038_v18 = vld [vmem:[%s2939_s2] ss:$0 sm:$0xff]  ;;  %v64_v30 = vld [vmem:[%s2943_s6 + $0x18] sm:$0xff]  ;;  %v2384_v2 = vld [vmem:[%s2942_s5 + $0x8] sm:$0xff] }
   0xd   :  { %v61_v22 = vld [vmem:[%s2943_s6] sm:$0xff]  ;;  %282 = vmatpush.msra.mxu3 %v2384_v2 }
   0xe   :  { %97 = vmatpush.msra.mxu1 %v80_v8  ;;  %v2039_v32 = vld [vmem:[%s2941_s4] ss:$0 sm:$0xff] }
   0xf   :  { %v2379_v1 = vld [vmem:[%s2942_s5] sm:$0xff] }
  0x10   :  { %98 = vmatpush.msra.mxu1 %v79_v9  ;;  %253 = vmatpush.msra.mxu2 %v2379_v1 }
  0x11   :  { %435 = vmatpush.msrb.mxu0 %v2379_v1  ;;  %617 = vmatpush.msrb.mxu3 %v2379_v1 }
  0x12   :  { %99 = vmatpush.msra.mxu1 %v78_v10  ;;  %464 = vmatpush.msrb.mxu2 %v2384_v2 }
  0x13   :  { %646 = vmatpush.msra.mxu0 %v2384_v2 }
  0x14   :  { %100 = vmatpush.msra.mxu1 %v77_v11 }
  0x16   :  { %101 = vmatpush.msra.mxu1 %v76_v12 }
  0x18   :  { %102 = vmatpush.msra.mxu1 %v75_v13 }
  0x1a   :  { %103 = vmatpush.msra.mxu1 %v74_v14 }
  0x1c   :  { %104 = vmatpush.msra.mxu1 %v73_v15 }
  0x1e   :  { %105 = vmatpush.msra.mxu1 %v72_v16 }
  0x20   :  { %106 = vmatpush.msra.mxu1 %v71_v17 }
  0x22   :  { %799 = vmatpush.msrb.mxu1 %v2379_v1 }
  0x80   :  { %v57_v19 = vpop.f32.mrf.mxu0 }
  0x81   :  { %v58_v20 = vadd.f32 %v2038_v18, %v57_v19  ;;  %v2397_v18 = vld [vmem:[%s2944_s7] sm:$0xff] }
  0x83   :  { %v60_v21 = vmax.f32 %v58_v20, 0.0 }
  0x85   :  { %v65_v23 = vperm.slane %v60_v21, 0  ;;  %v68_v27 = vperm.slane %v60_v21, 1 }
  0x87   :  { %v66_v24 = vadd.f32 %v65_v23, %v61_v22  ;;  %v67_v26 = vadd.f32 %v65_v23, %v62_v25  ;;  %v69_v29 = vadd.f32 %v68_v27, %v63_v28  ;;  %v70_v31 = vadd.f32 %v68_v27, %v64_v30 }
  0x89   :  { %107 = vmatmul.f32.vlgmr.msra.gmra.mxu1 %v66_v24 }
  0x8a   :  { %1163 = vmatpush.msra.mxu1 %v2379_v1 }
  0x91   :  { %110 = vmatmul.f32.gmra.mxu1 %v67_v26 }
  0x99   :  { %113 = vmatmul.f32.gmra.mxu1 %v69_v29 }
  0xa1   :  { %116 = vmatmul.f32.gmra.mxu1 %v70_v31 }
 0x106   :  { %v108_v33 = vpop.f32.mrf.mxu1 }
 0x107   :  { %v2343_v34 = vadd.f32 %v2039_v32, %v108_v33 }
 0x109   :  { %v126_v35 = vsel %vm36_vm0, %v2343_v34, -inf }
 0x10a   :  { %127 = vmax.xlane.f32.xlu0 %v126_v35 }
 0x10e   :  { %v111_v36 = vpop.f32.mrf.mxu1 }
 0x10f   :  { %v2347_v37 = vadd.f32 %v2039_v32, %v111_v36 }
 0x111   :  { %v129_v38 = vsel %vm36_vm0, %v2347_v37, -inf }
 0x112   :  { %130 = vmax.xlane.f32.xlu0 %v129_v38 }
 0x116   :  { %v114_v39 = vpop.f32.mrf.mxu1 }
 0x117   :  { %v2351_v40 = vadd.f32 %v2039_v32, %v114_v39 }
 0x119   :  { %v132_v41 = vsel %vm36_vm0, %v2351_v40, -inf }
 0x11a   :  { %133 = vmax.xlane.f32.xlu1 %v132_v41 }
 0x11e   :  { %v117_v42 = vpop.f32.mrf.mxu1 }
 0x11f   :  { %v2355_v43 = vadd.f32 %v2039_v32, %v117_v42  ;;  %v2407_v32 = vld [vmem:[%s2944_s7 + $0x8] sm:$0xff] }
 0x121   :  { %v135_v44 = vsel %vm36_vm0, %v2355_v43, -inf }
 0x122   :  { %136 = vmax.xlane.f32.xlu1 %v135_v44 }
 0x17d   :  { %v128_v45 = vpop.xlane.xlu0 %127 }
 0x17e   :  { %v138_v46 = vsub.f32 %v2343_v34, %v128_v45 }
 0x180   :  { %v142_v47 = vmul.f32 1.442695, %v138_v46 }
 0x182   :  { %2040 = vpow2.f32 %v142_v47 }
 0x185   :  { %v131_v48 = vpop.xlane.xlu0 %130 }
 0x186   :  { %v139_v49 = vsub.f32 %v2347_v37, %v131_v48  ;;  %v2416_v48 = vld [vmem:[%s2944_s7 + $0x10] sm:$0xff] }
 0x188   :  { %v2041_v50 = vpop.eup %2040  ;;  %v144_v51 = vmul.f32 1.442695, %v139_v49 }
 0x189   :  { %v150_v52 = vsel %vm36_vm0, %v2041_v50, 0.0 }
 0x18a   :  { %2042 = vpow2.f32 %v144_v51  ;;  %151 = vadd.xlane.f32.xlu2 %v150_v52 }
 0x18d   :  { %v134_v53 = vpop.xlane.xlu1 %133 }
 0x18e   :  { %v140_v54 = vsub.f32 %v2351_v40, %v134_v53 }
 0x190   :  { %v2363_v55 = vpop.eup %2042  ;;  %v146_v56 = vmul.f32 1.442695, %v140_v54 }
 0x191   :  { %v153_v57 = vsel %vm36_vm0, %v2363_v55, 0.0 }
 0x192   :  { %2044 = vpow2.f32 %v146_v56  ;;  %154 = vadd.xlane.f32.xlu2 %v153_v57 }
 0x195   :  { %v137_v58 = vpop.xlane.xlu1 %136 }
 0x196   :  { %v141_v59 = vsub.f32 %v2355_v43, %v137_v58 }
 0x198   :  { %v2368_v60 = vpop.eup %2044  ;;  %v148_v61 = vmul.f32 1.442695, %v141_v59  ;;  %v2425_v59 = vld [vmem:[%s2944_s7 + $0x18] sm:$0xff] }
 0x199   :  { %v156_v62 = vsel %vm36_vm0, %v2368_v60, 0.0 }
 0x19a   :  { %2046 = vpow2.f32 %v148_v61  ;;  %157 = vadd.xlane.f32.xlu0 %v156_v62 }
 0x1a0   :  { %v2372_v63 = vpop.eup %2046 }
 0x1a1   :  { %v159_v0 = vsel %vm36_vm0, %v2372_v63, 0.0 }
 0x1a2   :  { %160 = vadd.xlane.f32.xlu1 %v159_v0 }
 0x1fd   :  { %v152_v3 = vpop.xlane.xlu2 %151 }
 0x1fe   :  { %2048 = vrcp.f32 %v152_v3  ;;  %v173_v9 = vand.u32 2147483648, %v152_v3  ;;  %v171_v10 = vand.u32 2147483647, %v152_v3  ;;  %vm167_vm2 = vweird.f32 %v152_v3 }
 0x200   :  { %v174_v13 = vor.u32 1.1754944e-38, %v173_v9  ;;  %vm172_vm4 = vcmp.eq.f32.partialorder %v171_v10, 8.507059e+37 }
 0x204   :  { %v2049_v4 = vpop.eup %2048 }
 0x205   :  { %v163_v5 = vmul.f32 %v2049_v4, %v152_v3  ;;  %v155_v6 = vpop.xlane.xlu2 %154  ;;  %vm168_vm1 = vweird.f32 %v2049_v4 }
 0x206   :  { %2050 = vrcp.f32 %v155_v6  ;;  %vm169_vm3 = vmor %vm167_vm2, %vm168_vm1  ;;  %v188_v22 = vand.u32 2147483648, %v155_v6  ;;  %v186_v23 = vand.u32 2147483647, %v155_v6  ;;  %vm182_vm6 = vweird.f32 %v155_v6 }
 0x207   :  { %v164_v7 = vsub.f32 1.0, %v163_v5 }
 0x208   :  { %v189_v27 = vor.u32 1.1754944e-38, %v188_v22  ;;  %vm187_vm8 = vcmp.eq.f32.partialorder %v186_v23, 8.507059e+37 }
 0x209   :  { %v165_v8 = vmul.f32 %v2049_v4, %v164_v7 }
 0x20b   :  { %v166_v11 = vadd.f32 %v2049_v4, %v165_v8 }
 0x20c   :  { %v2051_v12 = vpop.eup %2050 }
 0x20d   :  { %v178_v14 = vmul.f32 %v2051_v12, %v155_v6  ;;  %v158_v15 = vpop.xlane.xlu0 %157  ;;  %v170_v16 = vsel %vm169_vm3, %v2049_v4, %v166_v11  ;;  %vm183_vm5 = vweird.f32 %v2051_v12 }
 0x20e   :  { %2052 = vrcp.f32 %v158_v15  ;;  %v175_v19 = vsel %vm172_vm4, %v174_v13, %v170_v16  ;;  %vm184_vm7 = vmor %vm182_vm6, %vm183_vm5  ;;  %v203_v35 = vand.u32 2147483648, %v158_v15  ;;  %v201_v39 = vand.u32 2147483647, %v158_v15 }
 0x20f   :  { %v179_v17 = vsub.f32 1.0, %v178_v14  ;;  %v176_v20 = vmul.f32 %v2041_v50, %v175_v19  ;;  %vm197_vm10 = vweird.f32 %v158_v15 }
 0x210   :  { %v204_v45 = vor.u32 1.1754944e-38, %v203_v35  ;;  %vm202_vm12 = vcmp.eq.f32.partialorder %v201_v39, 8.507059e+37 }
 0x211   :  { %v180_v21 = vmul.f32 %v2051_v12, %v179_v17  ;;  %v222_v24 = vsub.f32 %v176_v20, %v2397_v18 }
 0x213   :  { %v181_v25 = vadd.f32 %v2051_v12, %v180_v21  ;;  %1955 = vmatmul.msk.f32.vlgmr.msra.gmra.mxu2 %vm36_vm0, %v222_v24  ;;  %1959 = vmatmul.msk.f32.vlgmr.msra.gmra.mxu3 %vm36_vm0, %v222_v24 }
 0x214   :  { %v2053_v26 = vpop.eup %2052  ;;  %2031 = vmatpush.msra.mxu2 %v2379_v1  ;;  %2032 = vmatpush.msra.mxu3 %v2379_v1 }
 0x215   :  { %v193_v28 = vmul.f32 %v2053_v26, %v158_v15  ;;  %v161_v29 = vpop.xlane.xlu1 %160  ;;  %v185_v30 = vsel %vm184_vm7, %v2051_v12, %v181_v25  ;;  %vm198_vm9 = vweird.f32 %v2053_v26 }
 0x216   :  { %2054 = vrcp.f32 %v161_v29  ;;  %v190_v33 = vsel %vm187_vm8, %v189_v27, %v185_v30  ;;  %vm199_vm11 = vmor %vm197_vm10, %vm198_vm9  ;;  %v218_v52 = vand.u32 2147483648, %v161_v29  ;;  %v216_v54 = vand.u32 2147483647, %v161_v29 }
 0x217   :  { %v194_v31 = vsub.f32 1.0, %v193_v28  ;;  %v191_v36 = vmul.f32 %v2363_v55, %v190_v33  ;;  %vm212_vm14 = vweird.f32 %v161_v29 }
 0x218   :  { %v219_v57 = vor.u32 1.1754944e-38, %v218_v52  ;;  %vm217_vm1 = vcmp.eq.f32.partialorder %v216_v54, 8.507059e+37 }
 0x219   :  { %v195_v38 = vmul.f32 %v2053_v26, %v194_v31  ;;  %v223_v41 = vsub.f32 %v191_v36, %v2407_v32 }
 0x21b   :  { %v196_v42 = vadd.f32 %v2053_v26, %v195_v38  ;;  %1956 = vmatmul.msk.f32.gmra.mxu2 %vm36_vm0, %v223_v41  ;;  %1960 = vmatmul.msk.f32.gmra.mxu3 %vm36_vm0, %v223_v41 }
 0x21c   :  { %v2055_v44 = vpop.eup %2054 }
 0x21d   :  { %v208_v46 = vmul.f32 %v2055_v44, %v161_v29  ;;  %v200_v47 = vsel %vm199_vm11, %v2053_v26, %v196_v42  ;;  %vm213_vm13 = vweird.f32 %v2055_v44 }
 0x21e   :  { %v205_v49 = vsel %vm202_vm12, %v204_v45, %v200_v47  ;;  %vm214_vm15 = vmor %vm212_vm14, %vm213_vm13 }
 0x21f   :  { %v209_v50 = vsub.f32 1.0, %v208_v46  ;;  %v206_v51 = vmul.f32 %v2368_v60, %v205_v49 }
 0x221   :  { %v210_v53 = vmul.f32 %v2055_v44, %v209_v50  ;;  %v224_v55 = vsub.f32 %v206_v51, %v2416_v48 }
 0x223   :  { %v211_v56 = vadd.f32 %v2055_v44, %v210_v53  ;;  %1957 = vmatmul.msk.f32.gmra.mxu2 %vm36_vm0, %v224_v55  ;;  %1961 = vmatmul.msk.f32.gmra.mxu3 %vm36_vm0, %v224_v55 }
 0x225   :  { %v215_v58 = vsel %vm214_vm15, %v2055_v44, %v211_v56 }
 0x226   :  { %v220_v60 = vsel %vm217_vm1, %v219_v57, %v215_v58 }
 0x227   :  { %v221_v61 = vmul.f32 %v2372_v63, %v220_v60 }
 0x229   :  { %v225_v62 = vsub.f32 %v221_v61, %v2425_v59 }
 0x22b   :  { %1958 = vmatmul.msk.f32.gmra.mxu2 %vm36_vm0, %v225_v62  ;;  %1962 = vmatmul.msk.f32.gmra.mxu3 %vm36_vm0, %v225_v62 }
 0x296   :  { %v255_v0 = vpop.f32.mrf.mxu2 }
 0x297   :  { %v2432_v3 = vsub.f32 %v2343_v34, %v255_v0 }
 0x299   :  { %v308_v4 = vsel %vm36_vm0, %v2432_v3, -inf }
 0x29a   :  { %309 = vmax.xlane.f32.xlu2 %v308_v4 }
 0x29e   :  { %v258_v5 = vpop.f32.mrf.mxu2 }
 0x29f   :  { %v2437_v6 = vsub.f32 %v2347_v37, %v258_v5 }
 0x2a1   :  { %v311_v63 = vsel %vm36_vm0, %v2437_v6, -inf }
 0x2a2   :  { %312 = vmax.xlane.f32.xlu0 %v311_v63 }
 0x2a6   :  { %v261_v7 = vpop.f32.mrf.mxu2 }
 0x2a7   :  { %v2442_v8 = vsub.f32 %v2351_v40, %v261_v7 }
 0x2a9   :  { %v314_v34 = vsel %vm36_vm0, %v2442_v8, -inf }
 0x2aa   :  { %315 = vmax.xlane.f32.xlu1 %v314_v34 }
 0x2ae   :  { %v264_v9 = vpop.f32.mrf.mxu2 }
 0x2af   :  { %v2447_v10 = vsub.f32 %v2355_v43, %v264_v9 }
 0x2b1   :  { %v317_v37 = vsel %vm36_vm0, %v2447_v10, -inf }
 0x2b2   :  { %318 = vmax.xlane.f32.xlu2 %v317_v37 }
 0x30d   :  { %v310_v11 = vpop.xlane.xlu2 %309 }
 0x30e   :  { %v320_v12 = vsub.f32 %v2432_v3, %v310_v11 }
 0x310   :  { %v324_v13 = vmul.f32 1.442695, %v320_v12 }
 0x312   :  { %2056 = vpow2.f32 %v324_v13 }
 0x315   :  { %v313_v14 = vpop.xlane.xlu0 %312 }
 0x316   :  { %v321_v40 = vsub.f32 %v2437_v6, %v313_v14 }
 0x318   :  { %v2057_v15 = vpop.eup %2056  ;;  %v326_v16 = vmul.f32 1.442695, %v321_v40 }
 0x319   :  { %v332_v17 = vsel %vm36_vm0, %v2057_v15, 0.0 }
 0x31a   :  { %2058 = vpow2.f32 %v326_v16  ;;  %333 = vadd.xlane.f32.xlu0 %v332_v17 }
 0x31d   :  { %v316_v43 = vpop.xlane.xlu1 %315 }
 0x31e   :  { %v322_v19 = vsub.f32 %v2442_v8, %v316_v43 }
 0x320   :  { %v2059_v20 = vpop.eup %2058  ;;  %v328_v21 = vmul.f32 1.442695, %v322_v19 }
 0x321   :  { %v335_v22 = vsel %vm36_vm0, %v2059_v20, 0.0 }
 0x322   :  { %2060 = vpow2.f32 %v328_v21  ;;  %336 = vadd.xlane.f32.xlu1 %v335_v22 }
 0x325   :  { %v319_v23 = vpop.xlane.xlu2 %318 }
 0x326   :  { %v323_v24 = vsub.f32 %v2447_v10, %v319_v23 }
 0x328   :  { %v2457_v25 = vpop.eup %2060  ;;  %v330_v26 = vmul.f32 1.442695, %v323_v24 }
 0x329   :  { %v338_v27 = vsel %vm36_vm0, %v2457_v25, 0.0 }
 0x32a   :  { %2062 = vpow2.f32 %v330_v26  ;;  %339 = vadd.xlane.f32.xlu2 %v338_v27 }
 0x330   :  { %v2461_v28 = vpop.eup %2062 }
 0x331   :  { %v341_v29 = vsel %vm36_vm0, %v2461_v28, 0.0 }
 0x332   :  { %342 = vadd.xlane.f32.xlu0 %v341_v29  ;;  %v284_v29 = vpop.f32.mrf.mxu3 }
 0x38d   :  { %v334_v30 = vpop.xlane.xlu0 %333 }
 0x38e   :  { %2064 = vrcp.f32 %v334_v30  ;;  %v355_v39 = vand.u32 2147483648, %v334_v30  ;;  %v353_v41 = vand.u32 2147483647, %v334_v30  ;;  %vm349_vm3 = vweird.f32 %v334_v30 }
 0x390   :  { %v356_v46 = vor.u32 1.1754944e-38, %v355_v39  ;;  %vm354_vm5 = vcmp.eq.f32.partialorder %v353_v41, 8.507059e+37 }
 0x394   :  { %v2065_v31 = vpop.eup %2064 }
 0x395   :  { %v345_v33 = vmul.f32 %v2065_v31, %v334_v30  ;;  %v337_v35 = vpop.xlane.xlu1 %336  ;;  %vm350_vm2 = vweird.f32 %v2065_v31 }
 0x396   :  { %2066 = vrcp.f32 %v337_v35  ;;  %vm351_vm4 = vmor %vm349_vm3, %vm350_vm2  ;;  %v370_v54 = vand.u32 2147483648, %v337_v35  ;;  %v368_v55 = vand.u32 2147483647, %v337_v35  ;;  %vm364_vm7 = vweird.f32 %v337_v35 }
 0x397   :  { %v346_v36 = vsub.f32 1.0, %v345_v33 }
 0x398   :  { %v371_v60 = vor.u32 1.1754944e-38, %v370_v54  ;;  %vm369_vm9 = vcmp.eq.f32.partialorder %v368_v55, 8.507059e+37 }
 0x399   :  { %v347_v38 = vmul.f32 %v2065_v31, %v346_v36  ;;  %v300_v36 = vand.u32 2147483647, %v284_v29 }
 0x39b   :  { %v348_v42 = vadd.f32 %v2065_v31, %v347_v38 }
 0x39c   :  { %v2067_v44 = vpop.eup %2066 }
 0x39d   :  { %v352_v45 = vsel %vm351_vm4, %v2065_v31, %v348_v42  ;;  %v360_v47 = vmul.f32 %v2067_v44, %v337_v35  ;;  %v340_v49 = vpop.xlane.xlu2 %339  ;;  %vm365_vm6 = vweird.f32 %v2067_v44  ;;  %v287_v42 = vpop.f32.mrf.mxu3 }
 0x39e   :  { %2068 = vrcp.f32 %v340_v49  ;;  %v357_v51 = vsel %vm354_vm5, %v356_v46, %v352_v45  ;;  %vm366_vm8 = vmor %vm364_vm7, %vm365_vm6  ;;  %v385_v63 = vand.u32 2147483648, %v340_v49  ;;  %v383_v9 = vand.u32 2147483647, %v340_v49 }
 0x39f   :  { %v361_v50 = vsub.f32 1.0, %v360_v47  ;;  %v358_v52 = vmul.f32 %v2057_v15, %v357_v51  ;;  %vm379_vm11 = vweird.f32 %v340_v49  ;;  %v301_v45 = vand.u32 2147483647, %v287_v42 }
 0x3a0   :  { %v386_v13 = vor.u32 1.1754944e-38, %v385_v63  ;;  %vm384_vm13 = vcmp.eq.f32.partialorder %v383_v9, 8.507059e+37 }
 0x3a1   :  { %v362_v53 = vmul.f32 %v2067_v44, %v361_v50  ;;  %v404_v56 = vsub.f32 %v358_v52, %v2397_v18 }
 0x3a3   :  { %v363_v57 = vadd.f32 %v2067_v44, %v362_v53  ;;  %1963 = vmatmul.msk.f32.vlgmr.msrb.gmra.mxu0 %vm36_vm0, %v404_v56  ;;  %1967 = vmatmul.msk.f32.vlgmr.msrb.gmra.mxu2 %vm36_vm0, %v404_v56 }
 0x3a4   :  { %v2069_v58 = vpop.eup %2068  ;;  %828 = vmatpush.msrb.mxu2 %v2384_v2  ;;  %1010 = vmatpush.msrb.mxu0 %v2384_v2 }
 0x3a5   :  { %v375_v61 = vmul.f32 %v2069_v58, %v340_v49  ;;  %v343_v62 = vpop.xlane.xlu0 %342  ;;  %v367_v0 = vsel %vm366_vm8, %v2067_v44, %v363_v57  ;;  %vm380_vm10 = vweird.f32 %v2069_v58  ;;  %v290_v52 = vpop.f32.mrf.mxu3 }
 0x3a6   :  { %2070 = vrcp.f32 %v343_v62  ;;  %v372_v5 = vsel %vm369_vm9, %v371_v60, %v367_v0  ;;  %vm381_vm12 = vmor %vm379_vm11, %vm380_vm10  ;;  %v400_v43 = vand.u32 2147483648, %v343_v62  ;;  %vm394_vm15 = vweird.f32 %v343_v62 }
 0x3a7   :  { %v376_v4 = vsub.f32 1.0, %v375_v61  ;;  %v373_v7 = vmul.f32 %v2059_v20, %v372_v5  ;;  %v398_v20 = vand.u32 2147483647, %v343_v62  ;;  %v302_v53 = vand.u32 2147483647, %v290_v52 }
 0x3a8   :  { %v401_v23 = vor.u32 1.1754944e-38, %v400_v43 }
 0x3a9   :  { %v377_v34 = vmul.f32 %v2069_v58, %v376_v4  ;;  %v405_v37 = vsub.f32 %v373_v7, %v2407_v32  ;;  %vm399_vm2 = vcmp.eq.f32.partialorder %v398_v20, 8.507059e+37 }
 0x3ab   :  { %v378_v11 = vadd.f32 %v2069_v58, %v377_v34  ;;  %1964 = vmatmul.msk.f32.gmra.mxu0 %vm36_vm0, %v405_v37  ;;  %1968 = vmatmul.msk.f32.gmra.mxu2 %vm36_vm0, %v405_v37 }
 0x3ac   :  { %v2071_v12 = vpop.eup %2070 }
 0x3ad   :  { %v390_v14 = vmul.f32 %v2071_v12, %v343_v62  ;;  %v382_v40 = vsel %vm381_vm12, %v2069_v58, %v378_v11  ;;  %vm395_vm14 = vweird.f32 %v2071_v12 }
 0x3ae   :  { %v387_v15 = vsel %vm384_vm13, %v386_v13, %v382_v40  ;;  %vm396_vm1 = vmor %vm394_vm15, %vm395_vm14 }
 0x3af   :  { %v391_v16 = vsub.f32 1.0, %v390_v14  ;;  %v388_v17 = vmul.f32 %v2457_v25, %v387_v15 }
 0x3b1   :  { %v392_v19 = vmul.f32 %v2071_v12, %v391_v16  ;;  %v406_v21 = vsub.f32 %v388_v17, %v2416_v48 }
 0x3b3   :  { %v393_v22 = vadd.f32 %v2071_v12, %v392_v19  ;;  %1965 = vmatmul.msk.f32.gmra.mxu0 %vm36_vm0, %v406_v21  ;;  %1969 = vmatmul.msk.f32.gmra.mxu2 %vm36_vm0, %v406_v21 }
 0x3b5   :  { %v397_v24 = vsel %vm396_vm1, %v2071_v12, %v393_v22 }
 0x3b6   :  { %v402_v26 = vsel %vm399_vm2, %v401_v23, %v397_v24 }
 0x3b7   :  { %v403_v27 = vmul.f32 %v2461_v28, %v402_v26 }
 0x3b9   :  { %v407_v25 = vsub.f32 %v403_v27, %v2425_v59 }
 0x3bb   :  { %1966 = vmatmul.msk.f32.gmra.mxu0 %vm36_vm0, %v407_v25  ;;  %1970 = vmatmul.msk.f32.gmra.mxu2 %vm36_vm0, %v407_v25 }
 0x420   :  { %v437_v30 = vpop.f32.mrf.mxu0 }
 0x421   :  { %v2482_v31 = vsub.f32 %v2432_v3, %v437_v30 }
 0x423   :  { %v490_v33 = vsel %vm36_vm0, %v2482_v31, -inf }
 0x424   :  { %491 = vmax.xlane.f32.xlu1 %v490_v33 }
 0x426   :  { %v466_v35 = vpop.f32.mrf.mxu2 }
 0x427   :  { %v482_v38 = vand.u32 2147483647, %v466_v35 }
 0x428   :  { %v440_v39 = vpop.f32.mrf.mxu0 }
 0x429   :  { %v2486_v28 = vadd.f32 %v482_v38, %v300_v36  ;;  %v2489_v41 = vsub.f32 %v2437_v6, %v440_v39 }
 0x42b   :  { %v493_v44 = vsel %vm36_vm0, %v2489_v41, -inf }
 0x42c   :  { %494 = vmax.xlane.f32.xlu2 %v493_v44 }
 0x42e   :  { %v469_v3 = vpop.f32.mrf.mxu2 }
 0x42f   :  { %v483_v46 = vand.u32 2147483647, %v469_v3 }
 0x430   :  { %v443_v47 = vpop.f32.mrf.mxu0 }
 0x431   :  { %v2493_v49 = vadd.f32 %v483_v46, %v301_v45  ;;  %v2496_v50 = vsub.f32 %v2442_v8, %v443_v47 }
 0x433   :  { %v496_v51 = vsel %vm36_vm0, %v2496_v50, -inf }
 0x434   :  { %497 = vmax.xlane.f32.xlu0 %v496_v51 }
 0x436   :  { %v472_v6 = vpop.f32.mrf.mxu2 }
 0x437   :  { %v484_v54 = vand.u32 2147483647, %v472_v6 }
 0x438   :  { %v446_v55 = vpop.f32.mrf.mxu0 }
 0x439   :  { %v2500_v56 = vadd.f32 %v484_v54, %v302_v53  ;;  %v2503_v57 = vsub.f32 %v2447_v10, %v446_v55 }
 0x43b   :  { %v499_v58 = vsel %vm36_vm0, %v2503_v57, -inf }
 0x43c   :  { %500 = vmax.xlane.f32.xlu1 %v499_v58 }
 0x497   :  { %v492_v8 = vpop.xlane.xlu1 %491 }
 0x498   :  { %v502_v60 = vsub.f32 %v2482_v31, %v492_v8 }
 0x49a   :  { %v506_v61 = vmul.f32 1.442695, %v502_v60 }
 0x49c   :  { %2072 = vpow2.f32 %v506_v61 }
 0x49f   :  { %v495_v62 = vpop.xlane.xlu2 %494 }
 0x4a0   :  { %v503_v0 = vsub.f32 %v2489_v41, %v495_v62 }
 0x4a2   :  { %v2073_v4 = vpop.eup %2072  ;;  %v508_v5 = vmul.f32 1.442695, %v503_v0 }
 0x4a3   :  { %v514_v63 = vsel %vm36_vm0, %v2073_v4, 0.0 }
 0x4a4   :  { %2074 = vpow2.f32 %v508_v5  ;;  %515 = vadd.xlane.f32.xlu2 %v514_v63 }
 0x4a7   :  { %v498_v10 = vpop.xlane.xlu0 %497 }
 0x4a8   :  { %v504_v7 = vsub.f32 %v2496_v50, %v498_v10 }
 0x4aa   :  { %v2075_v34 = vpop.eup %2074  ;;  %v510_v9 = vmul.f32 1.442695, %v504_v7 }
 0x4ab   :  { %v517_v37 = vsel %vm36_vm0, %v2075_v34, 0.0 }
 0x4ac   :  { %2076 = vpow2.f32 %v510_v9  ;;  %518 = vadd.xlane.f32.xlu0 %v517_v37 }
 0x4af   :  { %v501_v11 = vpop.xlane.xlu1 %500 }
 0x4b0   :  { %v505_v12 = vsub.f32 %v2503_v57, %v501_v11 }
 0x4b2   :  { %v2513_v13 = vpop.eup %2076  ;;  %v512_v14 = vmul.f32 1.442695, %v505_v12 }
 0x4b3   :  { %v520_v40 = vsel %vm36_vm0, %v2513_v13, 0.0 }
 0x4b4   :  { %2078 = vpow2.f32 %v512_v14  ;;  %521 = vadd.xlane.f32.xlu1 %v520_v40 }
 0x4ba   :  { %v2517_v15 = vpop.eup %2078 }
 0x4bb   :  { %v523_v16 = vsel %vm36_vm0, %v2517_v15, 0.0 }
 0x4bc   :  { %524 = vadd.xlane.f32.xlu2 %v523_v16 }
 0x517   :  { %v516_v17 = vpop.xlane.xlu2 %515 }
 0x518   :  { %2080 = vrcp.f32 %v516_v17  ;;  %v537_v23 = vand.u32 2147483648, %v516_v17  ;;  %v535_v24 = vand.u32 2147483647, %v516_v17  ;;  %vm531_vm4 = vweird.f32 %v516_v17 }
 0x51a   :  { %v538_v29 = vor.u32 1.1754944e-38, %v537_v23  ;;  %vm536_vm6 = vcmp.eq.f32.partialorder %v535_v24, 8.507059e+37 }
 0x51e   :  { %v2081_v43 = vpop.eup %2080 }
 0x51f   :  { %v527_v19 = vmul.f32 %v2081_v43, %v516_v17  ;;  %v519_v20 = vpop.xlane.xlu0 %518  ;;  %vm532_vm3 = vweird.f32 %v2081_v43 }
 0x520   :  { %2082 = vrcp.f32 %v519_v20  ;;  %vm533_vm5 = vmor %vm531_vm4, %vm532_vm3  ;;  %v552_v42 = vand.u32 2147483648, %v519_v20  ;;  %v550_v44 = vand.u32 2147483647, %v519_v20  ;;  %vm546_vm8 = vweird.f32 %v519_v20 }
 0x521   :  { %v528_v21 = vsub.f32 1.0, %v527_v19  ;;  %v2537_v19 = vpop.f32.mrf.mxu3 }
 0x522   :  { %v553_v47 = vor.u32 1.1754944e-38, %v552_v42  ;;  %vm551_vm10 = vcmp.eq.f32.partialorder %v550_v44, 8.507059e+37 }
 0x523   :  { %v529_v22 = vmul.f32 %v2081_v43, %v528_v21 }
 0x525   :  { %v530_v26 = vadd.f32 %v2081_v43, %v529_v22 }
 0x526   :  { %v2083_v27 = vpop.eup %2082 }
 0x527   :  { %v534_v25 = vsel %vm533_vm5, %v2081_v43, %v530_v26  ;;  %v542_v30 = vmul.f32 %v2083_v27, %v519_v20  ;;  %v522_v33 = vpop.xlane.xlu1 %521  ;;  %vm547_vm7 = vweird.f32 %v2083_v27 }
 0x528   :  { %2084 = vrcp.f32 %v522_v33  ;;  %v539_v36 = vsel %vm536_vm6, %v538_v29, %v534_v25  ;;  %vm548_vm9 = vmor %vm546_vm8, %vm547_vm7  ;;  %v567_v55 = vand.u32 2147483648, %v522_v33  ;;  %v565_v60 = vand.u32 2147483647, %v522_v33 }
 0x529   :  { %v543_v35 = vsub.f32 1.0, %v542_v30  ;;  %v540_v38 = vmul.f32 %v2073_v4, %v539_v36  ;;  %vm561_vm12 = vweird.f32 %v522_v33 }
 0x52a   :  { %v568_v4 = vor.u32 1.1754944e-38, %v567_v55  ;;  %vm566_vm14 = vcmp.eq.f32.partialorder %v565_v60, 8.507059e+37 }
 0x52b   :  { %v544_v39 = vmul.f32 %v2083_v27, %v543_v35  ;;  %v586_v3 = vsub.f32 %v540_v38, %v2397_v18 }
 0x52d   :  { %v545_v45 = vadd.f32 %v2083_v27, %v544_v39  ;;  %1971 = vmatmul.msk.f32.vlgmr.msrb.gmra.mxu3 %vm36_vm0, %v586_v3  ;;  %1975 = vmatmul.msk.f32.vlgmr.msra.gmra.mxu0 %vm36_vm0, %v586_v3 }
 0x52e   :  { %v2085_v46 = vpop.eup %2084  ;;  %981 = vmatpush.msrb.mxu3 %v2379_v1  ;;  %1374 = vmatpush.msra.mxu0 %v2384_v2 }
 0x52f   :  { %v557_v51 = vmul.f32 %v2085_v46, %v522_v33  ;;  %v525_v52 = vpop.xlane.xlu2 %524  ;;  %v549_v6 = vsel %vm548_vm9, %v2083_v27, %v545_v45  ;;  %vm562_vm11 = vweird.f32 %v2085_v46 }
 0x530   :  { %2086 = vrcp.f32 %v525_v52  ;;  %v554_v54 = vsel %vm551_vm10, %v553_v47, %v549_v6  ;;  %vm563_vm13 = vmor %vm561_vm12, %vm562_vm11  ;;  %v582_v9 = vand.u32 2147483648, %v525_v52  ;;  %v580_v11 = vand.u32 2147483647, %v525_v52 }
 0x531   :  { %v558_v53 = vsub.f32 1.0, %v557_v51  ;;  %v555_v58 = vmul.f32 %v2075_v34, %v554_v54  ;;  %vm576_vm1 = vweird.f32 %v525_v52 }
 0x532   :  { %v583_v40 = vor.u32 1.1754944e-38, %v582_v9  ;;  %vm581_vm3 = vcmp.eq.f32.partialorder %v580_v11, 8.507059e+37 }
 0x533   :  { %v559_v8 = vmul.f32 %v2085_v46, %v558_v53  ;;  %v587_v61 = vsub.f32 %v555_v58, %v2407_v32 }
 0x535   :  { %v560_v62 = vadd.f32 %v2085_v46, %v559_v8  ;;  %1972 = vmatmul.msk.f32.gmra.mxu3 %vm36_vm0, %v587_v61  ;;  %1976 = vmatmul.msk.f32.gmra.mxu0 %vm36_vm0, %v587_v61 }
 0x536   :  { %v2087_v0 = vpop.eup %2086 }
 0x537   :  { %v572_v5 = vmul.f32 %v2087_v0, %v525_v52  ;;  %v564_v63 = vsel %vm563_vm13, %v2085_v46, %v560_v62  ;;  %vm577_vm15 = vweird.f32 %v2087_v0 }
 0x538   :  { %v569_v10 = vsel %vm566_vm14, %v568_v4, %v564_v63  ;;  %vm578_vm2 = vmor %vm576_vm1, %vm577_vm15 }
 0x539   :  { %v573_v7 = vsub.f32 1.0, %v572_v5  ;;  %v570_v34 = vmul.f32 %v2513_v13, %v569_v10 }
 0x53b   :  { %v574_v37 = vmul.f32 %v2087_v0, %v573_v7  ;;  %v588_v12 = vsub.f32 %v570_v34, %v2416_v48 }
 0x53d   :  { %v575_v14 = vadd.f32 %v2087_v0, %v574_v37  ;;  %1973 = vmatmul.msk.f32.gmra.mxu3 %vm36_vm0, %v588_v12  ;;  %1977 = vmatmul.msk.f32.gmra.mxu0 %vm36_vm0, %v588_v12 }
 0x53f   :  { %v579_v16 = vsel %vm578_vm2, %v2087_v0, %v575_v14 }
 0x540   :  { %v584_v17 = vsel %vm581_vm3, %v583_v40, %v579_v16 }
 0x541   :  { %v585_v43 = vmul.f32 %v2517_v15, %v584_v17 }
 0x543   :  { %v589_v13 = vsub.f32 %v585_v43, %v2425_v59 }
 0x545   :  { %1974 = vmatmul.msk.f32.gmra.mxu3 %vm36_vm0, %v589_v13  ;;  %1978 = vmatmul.msk.f32.gmra.mxu0 %vm36_vm0, %v589_v13 }
 0x5aa   :  { %v648_v20 = vpop.f32.mrf.mxu0 }
 0x5ab   :  { %v664_v21 = vand.u32 2147483647, %v648_v20 }
 0x5ad   :  { %v2540_v22 = vadd.f32 %v664_v21, %v2486_v28 }
 0x5b0   :  { %v619_v23 = vpop.f32.mrf.mxu3 }
 0x5b1   :  { %v2543_v24 = vsub.f32 %v2482_v31, %v619_v23 }
 0x5b2   :  { %v651_v26 = vpop.f32.mrf.mxu0 }
 0x5b3   :  { %v665_v27 = vand.u32 2147483647, %v651_v26  ;;  %v672_v15 = vsel %vm36_vm0, %v2543_v24, -inf }
 0x5b4   :  { %673 = vmax.xlane.f32.xlu0 %v672_v15 }
 0x5b5   :  { %v2548_v25 = vadd.f32 %v665_v27, %v2493_v49 }
 0x5b8   :  { %v622_v29 = vpop.f32.mrf.mxu3 }
 0x5b9   :  { %v2551_v30 = vsub.f32 %v2489_v41, %v622_v29 }
 0x5ba   :  { %v654_v33 = vpop.f32.mrf.mxu0 }
 0x5bb   :  { %v666_v28 = vand.u32 2147483647, %v654_v33  ;;  %v675_v35 = vsel %vm36_vm0, %v2551_v30, -inf }
 0x5bc   :  { %676 = vmax.xlane.f32.xlu1 %v675_v35 }
 0x5bd   :  { %v2556_v31 = vadd.f32 %v666_v28, %v2500_v56 }
 0x5c0   :  { %v625_v36 = vpop.f32.mrf.mxu3 }
 0x5c1   :  { %v2559_v38 = vsub.f32 %v2496_v50, %v625_v36 }
 0x5c3   :  { %v678_v49 = vsel %vm36_vm0, %v2559_v38, -inf }
 0x5c4   :  { %679 = vmax.xlane.f32.xlu2 %v678_v49 }
 0x5c8   :  { %v628_v39 = vpop.f32.mrf.mxu3 }
 0x5c9   :  { %v2564_v41 = vsub.f32 %v2503_v57, %v628_v39 }
 0x5cb   :  { %v681_v42 = vsel %vm36_vm0, %v2564_v41, -inf }
 0x5cc   :  { %682 = vmax.xlane.f32.xlu0 %v681_v42 }
 0x627   :  { %v674_v44 = vpop.xlane.xlu0 %673 }
 0x628   :  { %v684_v56 = vsub.f32 %v2543_v24, %v674_v44 }
 0x62a   :  { %v688_v3 = vmul.f32 1.442695, %v684_v56 }
 0x62c   :  { %2088 = vpow2.f32 %v688_v3 }
 0x62f   :  { %v677_v45 = vpop.xlane.xlu1 %676 }
 0x630   :  { %v685_v50 = vsub.f32 %v2551_v30, %v677_v45 }
 0x632   :  { %v2089_v46 = vpop.eup %2088  ;;  %v690_v47 = vmul.f32 1.442695, %v685_v50 }
 0x633   :  { %v696_v51 = vsel %vm36_vm0, %v2089_v46, 0.0 }
 0x634   :  { %2090 = vpow2.f32 %v690_v47  ;;  %697 = vadd.xlane.f32.xlu1 %v696_v51 }
 0x637   :  { %v680_v57 = vpop.xlane.xlu2 %679 }
 0x638   :  { %v686_v52 = vsub.f32 %v2559_v38, %v680_v57 }
 0x63a   :  { %v2091_v6 = vpop.eup %2090  ;;  %v692_v53 = vmul.f32 1.442695, %v686_v52 }
 0x63b   :  { %v699_v54 = vsel %vm36_vm0, %v2091_v6, 0.0 }
 0x63c   :  { %2092 = vpow2.f32 %v692_v53  ;;  %700 = vadd.xlane.f32.xlu2 %v699_v54 }
 0x63f   :  { %v683_v55 = vpop.xlane.xlu0 %682 }
 0x640   :  { %v687_v58 = vsub.f32 %v2564_v41, %v683_v55 }
 0x642   :  { %v2574_v8 = vpop.eup %2092  ;;  %v694_v60 = vmul.f32 1.442695, %v687_v58 }
 0x643   :  { %v702_v61 = vsel %vm36_vm0, %v2574_v8, 0.0 }
 0x644   :  { %2094 = vpow2.f32 %v694_v60  ;;  %703 = vadd.xlane.f32.xlu0 %v702_v61 }
 0x64a   :  { %v2578_v62 = vpop.eup %2094 }
 0x64b   :  { %v705_v0 = vsel %vm36_vm0, %v2578_v62, 0.0 }
 0x64c   :  { %706 = vadd.xlane.f32.xlu1 %v705_v0 }
 0x6a7   :  { %v698_v4 = vpop.xlane.xlu1 %697 }
 0x6a8   :  { %2096 = vrcp.f32 %v698_v4  ;;  %v719_v9 = vand.u32 2147483648, %v698_v4  ;;  %v717_v37 = vand.u32 2147483647, %v698_v4  ;;  %vm713_vm5 = vweird.f32 %v698_v4 }
 0x6aa   :  { %v720_v40 = vor.u32 1.1754944e-38, %v719_v9  ;;  %vm718_vm7 = vcmp.eq.f32.partialorder %v717_v37, 8.507059e+37 }
 0x6ae   :  { %v2097_v5 = vpop.eup %2096 }
 0x6af   :  { %v709_v63 = vmul.f32 %v2097_v5, %v698_v4  ;;  %v701_v10 = vpop.xlane.xlu2 %700  ;;  %vm714_vm4 = vweird.f32 %v2097_v5 }
 0x6b0   :  { %2098 = vrcp.f32 %v701_v10  ;;  %vm715_vm6 = vmor %vm713_vm5, %vm714_vm4  ;;  %v734_v23 = vand.u32 2147483648, %v701_v10  ;;  %v732_v26 = vand.u32 2147483647, %v701_v10  ;;  %vm728_vm9 = vweird.f32 %v701_v10 }
 0x6b1   :  { %v710_v7 = vsub.f32 1.0, %v709_v63 }
 0x6b2   :  { %v735_v33 = vor.u32 1.1754944e-38, %v734_v23  ;;  %vm733_vm11 = vcmp.eq.f32.partialorder %v732_v26, 8.507059e+37 }
 0x6b3   :  { %v711_v34 = vmul.f32 %v2097_v5, %v710_v7 }
 0x6b5   :  { %v712_v11 = vadd.f32 %v2097_v5, %v711_v34 }
 0x6b6   :  { %v2099_v12 = vpop.eup %2098 }
 0x6b7   :  { %v716_v14 = vsel %vm715_vm6, %v2097_v5, %v712_v11  ;;  %v724_v16 = vmul.f32 %v2099_v12, %v701_v10  ;;  %v704_v17 = vpop.xlane.xlu0 %703  ;;  %vm729_vm8 = vweird.f32 %v2099_v12 }
 0x6b8   :  { %2100 = vrcp.f32 %v704_v17  ;;  %v721_v13 = vsel %vm718_vm7, %v720_v40, %v716_v14  ;;  %vm730_vm10 = vmor %vm728_vm9, %vm729_vm8  ;;  %v749_v42 = vand.u32 2147483648, %v704_v17  ;;  %vm743_vm13 = vweird.f32 %v704_v17 }
 0x6b9   :  { %v725_v43 = vsub.f32 1.0, %v724_v16  ;;  %v722_v20 = vmul.f32 %v2089_v46, %v721_v13 }
 0x6ba   :  { %v750_v46 = vor.u32 1.1754944e-38, %v749_v42 }
 0x6bb   :  { %v726_v21 = vmul.f32 %v2099_v12, %v725_v43  ;;  %v768_v27 = vsub.f32 %v722_v20, %v2397_v18  ;;  %v747_v18 = vand.u32 2147483647, %v704_v17 }
 0x6bd   :  { %v727_v15 = vadd.f32 %v2099_v12, %v726_v21  ;;  %1979 = vmatmul.msk.f32.vlgmr.msrb.gmra.mxu1 %vm36_vm0, %v768_v27  ;;  %vm748_vm15 = vcmp.eq.f32.partialorder %v747_v18, 8.507059e+37 }
 0x6be   :  { %v2101_v29 = vpop.eup %2100  ;;  %1527 = vmatpush.msrb.mxu1 %v2379_v1 }
 0x6bf   :  { %v739_v28 = vmul.f32 %v2101_v29, %v704_v17  ;;  %v707_v35 = vpop.xlane.xlu1 %706  ;;  %v731_v36 = vsel %vm730_vm10, %v2099_v12, %v727_v15  ;;  %vm744_vm12 = vweird.f32 %v2101_v29 }
 0x6c0   :  { %2102 = vrcp.f32 %v707_v35  ;;  %v736_v39 = vsel %vm733_vm11, %v735_v33, %v731_v36  ;;  %vm745_vm14 = vmor %vm743_vm13, %vm744_vm12  ;;  %v762_v55 = vand.u32 2147483647, %v707_v35  ;;  %vm758_vm2 = vweird.f32 %v707_v35 }
 0x6c1   :  { %v740_v49 = vsub.f32 1.0, %v739_v28  ;;  %v737_v44 = vmul.f32 %v2091_v6, %v736_v39  ;;  %v764_v6 = vand.u32 2147483648, %v707_v35 }
 0x6c2   :  { %vm763_vm4 = vcmp.eq.f32.partialorder %v762_v55, 8.507059e+37 }
 0x6c3   :  { %v741_v56 = vmul.f32 %v2101_v29, %v740_v49  ;;  %v769_v3 = vsub.f32 %v737_v44, %v2407_v32  ;;  %v765_v60 = vor.u32 1.1754944e-38, %v764_v6 }
 0x6c5   :  { %v742_v45 = vadd.f32 %v2101_v29, %v741_v56  ;;  %1980 = vmatmul.msk.f32.gmra.mxu1 %vm36_vm0, %v769_v3 }
 0x6c6   :  { %v2103_v50 = vpop.eup %2102 }
 0x6c7   :  { %v746_v47 = vsel %vm745_vm14, %v2101_v29, %v742_v45  ;;  %v754_v51 = vmul.f32 %v2103_v50, %v707_v35  ;;  %vm759_vm1 = vweird.f32 %v2103_v50 }
 0x6c8   :  { %v751_v57 = vsel %vm748_vm15, %v750_v46, %v746_v47  ;;  %vm760_vm3 = vmor %vm758_vm2, %vm759_vm1 }
 0x6c9   :  { %v752_v52 = vmul.f32 %v2574_v8, %v751_v57  ;;  %v755_v53 = vsub.f32 1.0, %v754_v51 }
 0x6cb   :  { %v756_v54 = vmul.f32 %v2103_v50, %v755_v53  ;;  %v770_v32 = vsub.f32 %v752_v52, %v2416_v48 }
 0x6cd   :  { %v757_v58 = vadd.f32 %v2103_v50, %v756_v54  ;;  %1981 = vmatmul.msk.f32.vlgmr.msra.gmra.mxu2 %vm36_vm0, %v770_v32 }
 0x6ce   :  { %1192 = vmatpush.msra.mxu2 %v2384_v2 }
 0x6cf   :  { %v761_v61 = vsel %vm760_vm3, %v2103_v50, %v757_v58 }
 0x6d0   :  { %v766_v0 = vsel %vm763_vm4, %v765_v60, %v761_v61 }
 0x6d1   :  { %v767_v8 = vmul.f32 %v2578_v62, %v766_v0  ;;  %v2647_v0 = vld [vmem:[%s2944_s7] sm:$0xff] }
 0x6d3   :  { %v771_v4 = vsub.f32 %v767_v8, %v2425_v59 }
 0x6d5   :  { %1982 = vmatmul.msk.f32.vlgmr.msra.gmra.mxu3 %vm36_vm0, %v771_v4  ;;  %1983 = vmatmul.msk.f32.vlgmr.msrb.gmra.mxu2 %vm36_vm0, %v768_v27 }
 0x6d6   :  { %1345 = vmatpush.msra.mxu3 %v2379_v1  ;;  %1556 = vmatpush.msrb.mxu2 %v2384_v2  ;;  %v2610_v2 = vpop.f32.mrf.mxu2 }
 0x6dd   :  { %1984 = vmatmul.msk.f32.gmra.mxu2 %vm36_vm0, %v769_v3 }
 0x6e5   :  { %1985 = vmatmul.msk.f32.gmra.mxu2 %vm36_vm0, %v770_v32 }
 0x6ed   :  { %1986 = vmatmul.msk.f32.gmra.mxu2 %vm36_vm0, %v771_v4 }
 0x73a   :  { %v801_v48 = vpop.f32.mrf.mxu1 }
 0x73b   :  { %v2601_v5 = vsub.f32 %v2543_v24, %v801_v48 }
 0x73d   :  { %v854_v59 = vsel %vm36_vm0, %v2601_v5, -inf }
 0x73e   :  { %855 = vmax.xlane.f32.xlu2 %v854_v59 }
 0x742   :  { %v804_v62 = vpop.f32.mrf.mxu1 }
 0x743   :  { %v2606_v63 = vsub.f32 %v2551_v30, %v804_v62  ;;  %v2201_v62 = vld [vmem:[%s2942_s5] sm:$0xff] }
 0x745   :  { %v857_v1 = vsel %vm36_vm0, %v2606_v63, -inf }
 0x746   :  { %858 = vmax.xlane.f32.xlu0 %v857_v1  ;;  %v2658_v1 = vld [vmem:[%s2942_s5 + $0x8] sm:$0xff] }
 0x750   :  { %v807_v10 = vpop.f32.mrf.mxu2 }
 0x751   :  { %v2613_v7 = vsub.f32 %v2559_v38, %v807_v10 }
 0x753   :  { %v860_v24 = vsel %vm36_vm0, %v2613_v7, -inf }
 0x754   :  { %861 = vmax.xlane.f32.xlu1 %v860_v24 }
 0x758   :  { %v810_v34 = vpop.f32.mrf.mxu3  ;;  %v830_v9 = vpop.f32.mrf.mxu2 }
 0x759   :  { %v2618_v37 = vsub.f32 %v2564_v41, %v810_v34  ;;  %v846_v30 = vand.u32 2147483647, %v830_v9 }
 0x75b   :  { %v2621_v11 = vadd.f32 %v846_v30, %v2540_v22  ;;  %v863_v12 = vsel %vm36_vm0, %v2618_v37, -inf  ;;  %v2664_v30 = vld [vmem:[%s2944_s7 + $0x8] sm:$0xff] }
 0x75c   :  { %864 = vmax.xlane.f32.xlu2 %v863_v12 }
 0x760   :  { %v2625_v14 = vpop.f32.mrf.mxu2 }
 0x768   :  { %v836_v38 = vpop.f32.mrf.mxu2 }
 0x769   :  { %v848_v40 = vand.u32 2147483647, %v836_v38 }
 0x76b   :  { %v2628_v16 = vadd.f32 %v848_v40, %v2556_v31 }
 0x7b1   :  { %v856_v17 = vpop.xlane.xlu2 %855 }
 0x7b2   :  { %v866_v43 = vsub.f32 %v2601_v5, %v856_v17 }
 0x7b4   :  { %v870_v41 = vmul.f32 1.442695, %v866_v43 }
 0x7b6   :  { %2104 = vpow2.f32 %v870_v41 }
 0x7b9   :  { %v859_v13 = vpop.xlane.xlu0 %858 }
 0x7ba   :  { %v867_v22 = vsub.f32 %v2606_v63, %v859_v13 }
 0x7bc   :  { %v2105_v20 = vpop.eup %2104  ;;  %v872_v21 = vmul.f32 1.442695, %v867_v22 }
 0x7bd   :  { %v878_v23 = vsel %vm36_vm0, %v2105_v20, 0.0 }
 0x7be   :  { %2106 = vpow2.f32 %v872_v21  ;;  %879 = vadd.xlane.f32.xlu0 %v878_v23 }
 0x7c4   :  { %v2107_v26 = vpop.eup %2106 }
 0x7c5   :  { %v881_v27 = vsel %vm36_vm0, %v2107_v26, 0.0 }
 0x7c6   :  { %882 = vadd.xlane.f32.xlu1 %v881_v27 }
 0x7c7   :  { %v862_v31 = vpop.xlane.xlu1 %861 }
 0x7c8   :  { %v868_v15 = vsub.f32 %v2613_v7, %v862_v31 }
 0x7ca   :  { %v874_v29 = vmul.f32 1.442695, %v868_v15 }
 0x7cc   :  { %2108 = vpow2.f32 %v874_v29 }
 0x7cf   :  { %v865_v33 = vpop.xlane.xlu2 %864 }
 0x7d0   :  { %v869_v28 = vsub.f32 %v2618_v37, %v865_v33 }
 0x7d2   :  { %v2636_v35 = vpop.eup %2108  ;;  %v876_v36 = vmul.f32 1.442695, %v869_v28 }
 0x7d3   :  { %v884_v49 = vsel %vm36_vm0, %v2636_v35, 0.0 }
 0x7d4   :  { %2110 = vpow2.f32 %v876_v36  ;;  %885 = vadd.xlane.f32.xlu2 %v884_v49  ;;  %v2673_v36 = vld [vmem:[%s2944_s7 + $0x10] sm:$0xff] }
 0x7da   :  { %v2640_v39 = vpop.eup %2110 }
 0x7db   :  { %v887_v42 = vsel %vm36_vm0, %v2640_v39, 0.0 }
 0x7dc   :  { %888 = vadd.xlane.f32.xlu0 %v887_v42 }
 0x831   :  { %v880_v44 = vpop.xlane.xlu0 %879 }
 0x832   :  { %2112 = vrcp.f32 %v880_v44  ;;  %v901_v50 = vand.u32 2147483648, %v880_v44  ;;  %v899_v47 = vand.u32 2147483647, %v880_v44  ;;  %vm895_vm6 = vweird.f32 %v880_v44 }
 0x834   :  { %v902_v52 = vor.u32 1.1754944e-38, %v901_v50  ;;  %vm900_vm8 = vcmp.eq.f32.partialorder %v899_v47, 8.507059e+37  ;;  %v2687_v50 = vpop.f32.mrf.mxu0 }
 0x838   :  { %v2113_v56 = vpop.eup %2112 }
 0x839   :  { %v891_v18 = vmul.f32 %v2113_v56, %v880_v44  ;;  %v883_v3 = vpop.xlane.xlu1 %882  ;;  %vm896_vm5 = vweird.f32 %v2113_v56 }
 0x83a   :  { %2114 = vrcp.f32 %v883_v3  ;;  %vm897_vm7 = vmor %vm895_vm6, %vm896_vm5  ;;  %v916_v58 = vand.u32 2147483648, %v883_v3  ;;  %v914_v61 = vand.u32 2147483647, %v883_v3  ;;  %vm910_vm10 = vweird.f32 %v883_v3 }
 0x83b   :  { %v892_v45 = vsub.f32 1.0, %v891_v18 }
 0x83c   :  { %v917_v59 = vor.u32 1.1754944e-38, %v916_v58  ;;  %vm915_vm12 = vcmp.eq.f32.partialorder %v914_v61, 8.507059e+37 }
 0x83d   :  { %v893_v46 = vmul.f32 %v2113_v56, %v892_v45 }
 0x83f   :  { %v894_v51 = vadd.f32 %v2113_v56, %v893_v46 }
 0x840   :  { %v2115_v57 = vpop.eup %2114 }
 0x841   :  { %v898_v53 = vsel %vm897_vm7, %v2113_v56, %v894_v51  ;;  %v906_v6 = vmul.f32 %v2115_v57, %v883_v3  ;;  %vm911_vm9 = vweird.f32 %v2115_v57  ;;  %v2682_v3 = vld [vmem:[%s2944_s7 + $0x18] sm:$0xff] }
 0x842   :  { %v903_v54 = vsel %vm900_vm8, %v902_v52, %v898_v53  ;;  %vm912_vm11 = vmor %vm910_vm10, %vm911_vm9 }
 0x843   :  { %v904_v55 = vmul.f32 %v2105_v20, %v903_v54  ;;  %v907_v32 = vsub.f32 1.0, %v906_v6 }
 0x845   :  { %v908_v60 = vmul.f32 %v2115_v57, %v907_v32  ;;  %v950_v8 = vsub.f32 %v904_v55, %v2647_v0 }
 0x847   :  { %v886_v4 = vpop.xlane.xlu2 %885  ;;  %v909_v48 = vadd.f32 %v2115_v57, %v908_v60  ;;  %1987 = vmatmul.msk.f32.vlgmr.msrb.gmra.mxu3 %vm36_vm0, %v950_v8  ;;  %1991 = vmatmul.msk.f32.vlgmr.msrb.gmra.mxu0 %vm36_vm0, %v950_v8 }
 0x848   :  { %2116 = vrcp.f32 %v886_v4  ;;  %1709 = vmatpush.msrb.mxu3 %v2201_v62  ;;  %1738 = vmatpush.msrb.mxu0 %v2658_v1  ;;  %v931_v43 = vand.u32 2147483648, %v886_v4  ;;  %v929_v13 = vand.u32 2147483647, %v886_v4  ;;  %vm925_vm14 = vweird.f32 %v886_v4 }
 0x849   :  { %v913_v10 = vsel %vm912_vm11, %v2115_v57, %v909_v48 }
 0x84a   :  { %v918_v24 = vsel %vm915_vm12, %v917_v59, %v913_v10  ;;  %v932_v21 = vor.u32 1.1754944e-38, %v931_v43  ;;  %vm930_vm1 = vcmp.eq.f32.partialorder %v929_v13, 8.507059e+37 }
 0x84b   :  { %v919_v34 = vmul.f32 %v2107_v26, %v918_v24 }
 0x84d   :  { %v951_v12 = vsub.f32 %v919_v34, %v2664_v30 }
 0x84e   :  { %v2117_v9 = vpop.eup %2116 }
 0x84f   :  { %v921_v38 = vmul.f32 %v2117_v9, %v886_v4  ;;  %v889_v40 = vpop.xlane.xlu0 %888  ;;  %1988 = vmatmul.msk.f32.gmra.mxu3 %vm36_vm0, %v951_v12  ;;  %1992 = vmatmul.msk.f32.gmra.mxu0 %vm36_vm0, %v951_v12  ;;  %vm926_vm13 = vweird.f32 %v2117_v9 }
 0x850   :  { %2118 = vrcp.f32 %v889_v40  ;;  %vm927_vm15 = vmor %vm925_vm14, %vm926_vm13  ;;  %v946_v29 = vand.u32 2147483648, %v889_v40  ;;  %v944_v28 = vand.u32 2147483647, %v889_v40  ;;  %vm940_vm3 = vweird.f32 %v889_v40 }
 0x851   :  { %v922_v17 = vsub.f32 1.0, %v921_v38 }
 0x852   :  { %v947_v44 = vor.u32 1.1754944e-38, %v946_v29  ;;  %vm945_vm5 = vcmp.eq.f32.partialorder %v944_v28, 8.507059e+37 }
 0x853   :  { %v923_v41 = vmul.f32 %v2117_v9, %v922_v17 }
 0x855   :  { %v924_v22 = vadd.f32 %v2117_v9, %v923_v41 }
 0x856   :  { %v2119_v20 = vpop.eup %2118 }
 0x857   :  { %v936_v23 = vmul.f32 %v2119_v20, %v889_v40  ;;  %v928_v26 = vsel %vm927_vm15, %v2117_v9, %v924_v22  ;;  %vm941_vm2 = vweird.f32 %v2119_v20 }
 0x858   :  { %v933_v27 = vsel %vm930_vm1, %v932_v21, %v928_v26  ;;  %vm942_vm4 = vmor %vm940_vm3, %vm941_vm2 }
 0x859   :  { %v937_v31 = vsub.f32 1.0, %v936_v23  ;;  %v934_v15 = vmul.f32 %v2636_v35, %v933_v27 }
 0x85b   :  { %v938_v33 = vmul.f32 %v2119_v20, %v937_v31  ;;  %v952_v49 = vsub.f32 %v934_v15, %v2673_v36 }
 0x85d   :  { %v939_v42 = vadd.f32 %v2119_v20, %v938_v33  ;;  %1989 = vmatmul.msk.f32.gmra.mxu3 %vm36_vm0, %v952_v49  ;;  %1993 = vmatmul.msk.f32.gmra.mxu0 %vm36_vm0, %v952_v49 }
 0x85f   :  { %v943_v35 = vsel %vm942_vm4, %v2119_v20, %v939_v42 }
 0x860   :  { %v948_v56 = vsel %vm945_vm5, %v947_v44, %v943_v35 }
 0x861   :  { %v949_v18 = vmul.f32 %v2640_v39, %v948_v56 }
 0x863   :  { %v953_v45 = vsub.f32 %v949_v18, %v2682_v3 }
 0x865   :  { %1990 = vmatmul.msk.f32.gmra.mxu3 %vm36_vm0, %v953_v45  ;;  %1994 = vmatmul.msk.f32.gmra.mxu0 %vm36_vm0, %v953_v45 }
 0x8c4   :  { %v1012_v46 = vpop.f32.mrf.mxu0 }
 0x8c5   :  { %v1028_v47 = vand.u32 2147483647, %v1012_v46 }
 0x8c7   :  { %v2690_v51 = vadd.f32 %v1028_v47, %v2621_v11 }
 0x8ca   :  { %v983_v57 = vpop.f32.mrf.mxu3 }
 0x8cb   :  { %v2693_v39 = vsub.f32 %v2601_v5, %v983_v57 }
 0x8cc   :  { %v2697_v53 = vpop.f32.mrf.mxu0 }
 0x8cd   :  { %v1036_v52 = vsel %vm36_vm0, %v2693_v39, -inf }
 0x8ce   :  { %1037 = vmax.xlane.f32.xlu1 %v1036_v52 }
 0x8d2   :  { %v986_v6 = vpop.f32.mrf.mxu3 }
 0x8d3   :  { %v2700_v54 = vsub.f32 %v2606_v63, %v986_v6 }
 0x8d5   :  { %v1039_v55 = vsel %vm36_vm0, %v2700_v54, -inf }
 0x8d6   :  { %1040 = vmax.xlane.f32.xlu2 %v1039_v55 }
 0x8da   :  { %v1018_v11 = vpop.f32.mrf.mxu0 }
 0x8db   :  { %v1030_v32 = vand.u32 2147483647, %v1018_v11 }
 0x8dd   :  { %v2705_v58 = vadd.f32 %v1030_v32, %v2628_v16 }
 0x8e0   :  { %v989_v5 = vpop.f32.mrf.mxu3 }
 0x8e1   :  { %v2708_v60 = vsub.f32 %v2613_v7, %v989_v5 }
 0x8e3   :  { %v1042_v61 = vsel %vm36_vm0, %v2708_v60, -inf }
 0x8e4   :  { %1043 = vmax.xlane.f32.xlu0 %v1042_v61 }
 0x8e8   :  { %v992_v8 = vpop.f32.mrf.mxu3 }
 0x8e9   :  { %v2713_v63 = vsub.f32 %v2618_v37, %v992_v8 }
 0x8eb   :  { %v1045_v4 = vsel %vm36_vm0, %v2713_v63, -inf }
 0x8ec   :  { %1046 = vmax.xlane.f32.xlu1 %v1045_v4 }
 0x941   :  { %v1038_v48 = vpop.xlane.xlu1 %1037 }
 0x942   :  { %v1048_v16 = vsub.f32 %v2693_v39, %v1038_v48 }
 0x944   :  { %v1052_v59 = vmul.f32 1.442695, %v1048_v16 }
 0x946   :  { %2120 = vpow2.f32 %v1052_v59 }
 0x949   :  { %v1041_v62 = vpop.xlane.xlu2 %1040 }
 0x94a   :  { %v1049_v7 = vsub.f32 %v2700_v54, %v1041_v62 }
 0x94c   :  { %v2121_v10 = vpop.eup %2120  ;;  %v1054_v24 = vmul.f32 1.442695, %v1049_v7 }
 0x94d   :  { %v1060_v34 = vsel %vm36_vm0, %v2121_v10, 0.0 }
 0x94e   :  { %2122 = vpow2.f32 %v1054_v24  ;;  %1061 = vadd.xlane.f32.xlu2 %v1060_v34 }
 0x954   :  { %v2123_v37 = vpop.eup %2122 }
 0x955   :  { %v1063_v9 = vsel %vm36_vm0, %v2123_v37, 0.0 }
 0x956   :  { %1064 = vadd.xlane.f32.xlu0 %v1063_v9 }
 0x957   :  { %v1044_v12 = vpop.xlane.xlu0 %1043 }
 0x958   :  { %v1050_v38 = vsub.f32 %v2708_v60, %v1044_v12 }
 0x95a   :  { %v1056_v40 = vmul.f32 1.442695, %v1050_v38 }
 0x95c   :  { %2124 = vpow2.f32 %v1056_v40 }
 0x95f   :  { %v1047_v17 = vpop.xlane.xlu1 %1046 }
 0x960   :  { %v1051_v43 = vsub.f32 %v2713_v63, %v1047_v17 }
 0x962   :  { %v2723_v41 = vpop.eup %2124  ;;  %v1058_v13 = vmul.f32 1.442695, %v1051_v43 }
 0x963   :  { %v1066_v22 = vsel %vm36_vm0, %v2723_v41, 0.0 }
 0x964   :  { %2126 = vpow2.f32 %v1058_v13  ;;  %1067 = vadd.xlane.f32.xlu1 %v1066_v22 }
 0x96a   :  { %v2727_v20 = vpop.eup %2126 }
 0x96b   :  { %v1069_v21 = vsel %vm36_vm0, %v2727_v20, 0.0 }
 0x96c   :  { %1070 = vadd.xlane.f32.xlu2 %v1069_v21 }
 0x9c1   :  { %v1062_v23 = vpop.xlane.xlu2 %1061 }
 0x9c2   :  { %2128 = vrcp.f32 %v1062_v23  ;;  %v1083_v29 = vand.u32 2147483648, %v1062_v23  ;;  %v1081_v28 = vand.u32 2147483647, %v1062_v23  ;;  %vm1077_vm7 = vweird.f32 %v1062_v23 }
 0x9c4   :  { %v1084_v44 = vor.u32 1.1754944e-38, %v1083_v29  ;;  %vm1082_vm9 = vcmp.eq.f32.partialorder %v1081_v28, 8.507059e+37 }
 0x9c8   :  { %v2129_v26 = vpop.eup %2128 }
 0x9c9   :  { %v1073_v27 = vmul.f32 %v2129_v26, %v1062_v23  ;;  %v1065_v31 = vpop.xlane.xlu0 %1064  ;;  %vm1078_vm6 = vweird.f32 %v2129_v26 }
 0x9ca   :  { %2130 = vrcp.f32 %v1065_v31  ;;  %vm1079_vm8 = vmor %vm1077_vm7, %vm1078_vm6  ;;  %v1098_v47 = vand.u32 2147483648, %v1065_v31  ;;  %v1096_v52 = vand.u32 2147483647, %v1065_v31  ;;  %vm1092_vm11 = vweird.f32 %v1065_v31 }
 0x9cb   :  { %v1074_v15 = vsub.f32 1.0, %v1073_v27 }
 0x9cc   :  { %v1099_v32 = vor.u32 1.1754944e-38, %v1098_v47  ;;  %vm1097_vm13 = vcmp.eq.f32.partialorder %v1096_v52, 8.507059e+37 }
 0x9cd   :  { %v1075_v33 = vmul.f32 %v2129_v26, %v1074_v15 }
 0x9cf   :  { %v1076_v49 = vadd.f32 %v2129_v26, %v1075_v33 }
 0x9d0   :  { %v2131_v42 = vpop.eup %2130 }
 0x9d1   :  { %v1080_v35 = vsel %vm1079_vm8, %v2129_v26, %v1076_v49  ;;  %v1088_v56 = vmul.f32 %v2131_v42, %v1065_v31  ;;  %vm1093_vm10 = vweird.f32 %v2131_v42 }
 0x9d2   :  { %v1085_v18 = vsel %vm1082_vm9, %v1084_v44, %v1080_v35  ;;  %vm1094_vm12 = vmor %vm1092_vm11, %vm1093_vm10 }
 0x9d3   :  { %v1086_v45 = vmul.f32 %v2121_v10, %v1085_v18  ;;  %v1089_v46 = vsub.f32 1.0, %v1088_v56 }
 0x9d5   :  { %v1090_v57 = vmul.f32 %v2131_v42, %v1089_v46  ;;  %v1132_v6 = vsub.f32 %v1086_v45, %v2647_v0 }
 0x9d7   :  { %v1068_v55 = vpop.xlane.xlu1 %1067  ;;  %v1091_v11 = vadd.f32 %v2131_v42, %v1090_v57  ;;  %1995 = vmatmul.msk.f32.vlgmr.msra.gmra.mxu1 %vm36_vm0, %v1132_v6  ;;  %1999 = vmatmul.msk.f32.vlgmr.msra.gmra.mxu2 %vm36_vm0, %v1132_v6 }
 0x9d8   :  { %2132 = vrcp.f32 %v1068_v55  ;;  %1891 = vmatpush.msra.mxu1 %v2658_v1  ;;  %v1113_v7 = vand.u32 2147483648, %v1068_v55  ;;  %v1111_v24 = vand.u32 2147483647, %v1068_v55  ;;  %vm1107_vm15 = vweird.f32 %v1068_v55 }
 0x9d9   :  { %v1095_v5 = vsel %vm1094_vm12, %v2131_v42, %v1091_v11 }
 0x9da   :  { %v1100_v61 = vsel %vm1097_vm13, %v1099_v32, %v1095_v5  ;;  %vm1112_vm2 = vcmp.eq.f32.partialorder %v1111_v24, 8.507059e+37 }
 0x9db   :  { %v1101_v8 = vmul.f32 %v2123_v37, %v1100_v61  ;;  %v1114_v37 = vor.u32 1.1754944e-38, %v1113_v7 }
 0x9dd   :  { %v1133_v48 = vsub.f32 %v1101_v8, %v2664_v30 }
 0x9de   :  { %v2133_v4 = vpop.eup %2132 }
 0x9df   :  { %v1103_v16 = vmul.f32 %v2133_v4, %v1068_v55  ;;  %v1071_v59 = vpop.xlane.xlu2 %1070  ;;  %1996 = vmatmul.msk.f32.gmra.mxu1 %vm36_vm0, %v1133_v48  ;;  %2000 = vmatmul.msk.f32.gmra.mxu2 %vm36_vm0, %v1133_v48  ;;  %vm1108_vm14 = vweird.f32 %v2133_v4 }
 0x9e0   :  { %2134 = vrcp.f32 %v1071_v59  ;;  %vm1109_vm1 = vmor %vm1107_vm15, %vm1108_vm14  ;;  %v1128_v43 = vand.u32 2147483648, %v1071_v59  ;;  %v1126_v22 = vand.u32 2147483647, %v1071_v59  ;;  %vm1122_vm4 = vweird.f32 %v1071_v59 }
 0x9e1   :  { %v1104_v62 = vsub.f32 1.0, %v1103_v16 }
 0x9e2   :  { %v1129_v26 = vor.u32 1.1754944e-38, %v1128_v43  ;;  %vm1127_vm6 = vcmp.eq.f32.partialorder %v1126_v22, 8.507059e+37 }
 0x9e3   :  { %v1105_v10 = vmul.f32 %v2133_v4, %v1104_v62 }
 0x9e5   :  { %v1106_v1 = vadd.f32 %v2133_v4, %v1105_v10 }
 0x9e6   :  { %v2135_v34 = vpop.eup %2134 }
 0x9e7   :  { %v1118_v9 = vmul.f32 %v2135_v34, %v1071_v59  ;;  %v1110_v12 = vsel %vm1109_vm1, %v2133_v4, %v1106_v1  ;;  %vm1123_vm3 = vweird.f32 %v2135_v34 }
 0x9e8   :  { %v1115_v38 = vsel %vm1112_vm2, %v1114_v37, %v1110_v12  ;;  %vm1124_vm5 = vmor %vm1122_vm4, %vm1123_vm3 }
 0x9e9   :  { %v1119_v40 = vsub.f32 1.0, %v1118_v9  ;;  %v1116_v17 = vmul.f32 %v2723_v41, %v1115_v38 }
 0x9eb   :  { %v1120_v13 = vmul.f32 %v2135_v34, %v1119_v40  ;;  %v1134_v21 = vsub.f32 %v1116_v17, %v2673_v36 }
 0x9ed   :  { %v1121_v23 = vadd.f32 %v2135_v34, %v1120_v13  ;;  %1997 = vmatmul.msk.f32.gmra.mxu1 %vm36_vm0, %v1134_v21  ;;  %2001 = vmatmul.msk.f32.gmra.mxu2 %vm36_vm0, %v1134_v21 }
 0x9ef   :  { %v1125_v27 = vsel %vm1124_vm5, %v2135_v34, %v1121_v23 }
 0x9f0   :  { %v1130_v31 = vsel %vm1127_vm6, %v1129_v26, %v1125_v27 }
 0x9f1   :  { %v1131_v15 = vmul.f32 %v2727_v20, %v1130_v31 }
 0x9f3   :  { %v1135_v41 = vsub.f32 %v1131_v15, %v2682_v3 }
 0x9f5   :  { %1998 = vmatmul.msk.f32.gmra.mxu1 %vm36_vm0, %v1135_v41  ;;  %2002 = vmatmul.msk.f32.gmra.mxu2 %vm36_vm0, %v1135_v41 }
 0xa54   :  { %v1165_v29 = vpop.f32.mrf.mxu1 }
 0xa55   :  { %v2747_v33 = vsub.f32 %v2693_v39, %v1165_v29 }
 0xa57   :  { %v1218_v28 = vsel %vm36_vm0, %v2747_v33, -inf }
 0xa58   :  { %1219 = vmax.xlane.f32.xlu0 %v1218_v28 }
 0xa5c   :  { %v1168_v49 = vpop.f32.mrf.mxu1 }
 0xa5d   :  { %v2752_v42 = vsub.f32 %v2700_v54, %v1168_v49 }
 0xa5f   :  { %v1221_v20 = vsel %vm36_vm0, %v2752_v42, -inf }
 0xa60   :  { %1222 = vmax.xlane.f32.xlu1 %v1221_v20 }
 0xa6a   :  { %v1171_v44 = vpop.f32.mrf.mxu1 }
 0xa6b   :  { %v2757_v35 = vsub.f32 %v2708_v60, %v1171_v44 }
 0xa6d   :  { %v1224_v39 = vsel %vm36_vm0, %v2757_v35, -inf }
 0xa6e   :  { %1225 = vmax.xlane.f32.xlu2 %v1224_v39 }
 0xa72   :  { %v1174_v56 = vpop.f32.mrf.mxu1 }
 0xa73   :  { %v2762_v18 = vsub.f32 %v2713_v63, %v1174_v56 }
 0xa75   :  { %v1227_v54 = vsel %vm36_vm0, %v2762_v18, -inf }
 0xa76   :  { %1228 = vmax.xlane.f32.xlu0 %v1227_v54 }
 0xacb   :  { %v1220_v45 = vpop.xlane.xlu0 %1219 }
 0xacc   :  { %v1230_v46 = vsub.f32 %v2747_v33, %v1220_v45 }
 0xace   :  { %v1234_v47 = vmul.f32 1.442695, %v1230_v46 }
 0xad0   :  { %2136 = vpow2.f32 %v1234_v47 }
 0xad3   :  { %v1223_v57 = vpop.xlane.xlu1 %1222 }
 0xad4   :  { %v1231_v60 = vsub.f32 %v2752_v42, %v1223_v57 }
 0xad6   :  { %v2137_v52 = vpop.eup %2136  ;;  %v1236_v6 = vmul.f32 1.442695, %v1231_v60 }
 0xad7   :  { %v1242_v55 = vsel %vm36_vm0, %v2137_v52, 0.0 }
 0xad8   :  { %2138 = vpow2.f32 %v1236_v6  ;;  %1243 = vadd.xlane.f32.xlu1 %v1242_v55 }
 0xade   :  { %v2139_v63 = vpop.eup %2138 }
 0xadf   :  { %v1245_v11 = vsel %vm36_vm0, %v2139_v63, 0.0 }
 0xae0   :  { %1246 = vadd.xlane.f32.xlu2 %v1245_v11 }
 0xae1   :  { %v1226_v32 = vpop.xlane.xlu2 %1225 }
 0xae2   :  { %v1232_v5 = vsub.f32 %v2757_v35, %v1226_v32 }
 0xae4   :  { %v1238_v61 = vmul.f32 1.442695, %v1232_v5 }
 0xae6   :  { %2140 = vpow2.f32 %v1238_v61 }
 0xae9   :  { %v1229_v8 = vpop.xlane.xlu0 %1228 }
 0xaea   :  { %v1233_v4 = vsub.f32 %v2762_v18, %v1229_v8 }
 0xaec   :  { %v2772_v48 = vpop.eup %2140  ;;  %v1240_v16 = vmul.f32 1.442695, %v1233_v4 }
 0xaed   :  { %v1248_v59 = vsel %vm36_vm0, %v2772_v48, 0.0 }
 0xaee   :  { %2142 = vpow2.f32 %v1240_v16  ;;  %1249 = vadd.xlane.f32.xlu0 %v1248_v59 }
 0xaf4   :  { %v2776_v62 = vpop.eup %2142 }
 0xaf5   :  { %v1251_v7 = vsel %vm36_vm0, %v2776_v62, 0.0 }
 0xaf6   :  { %1252 = vadd.xlane.f32.xlu1 %v1251_v7 }
 0xb4b   :  { %v1244_v10 = vpop.xlane.xlu1 %1243 }
 0xb4c   :  { %2144 = vrcp.f32 %v1244_v10  ;;  %v1265_v9 = vand.u32 2147483648, %v1244_v10  ;;  %v1263_v38 = vand.u32 2147483647, %v1244_v10  ;;  %vm1259_vm8 = vweird.f32 %v1244_v10 }
 0xb4e   :  { %v1266_v43 = vor.u32 1.1754944e-38, %v1265_v9  ;;  %vm1264_vm10 = vcmp.eq.f32.partialorder %v1263_v38, 8.507059e+37 }
 0xb52   :  { %v2145_v24 = vpop.eup %2144 }
 0xb53   :  { %v1255_v1 = vmul.f32 %v2145_v24, %v1244_v10  ;;  %v1247_v34 = vpop.xlane.xlu2 %1246  ;;  %vm1260_vm7 = vweird.f32 %v2145_v24 }
 0xb54   :  { %2146 = vrcp.f32 %v1247_v34  ;;  %vm1261_vm9 = vmor %vm1259_vm8, %vm1260_vm7  ;;  %v1280_v27 = vand.u32 2147483648, %v1247_v34  ;;  %v1278_v15 = vand.u32 2147483647, %v1247_v34  ;;  %vm1274_vm12 = vweird.f32 %v1247_v34 }
 0xb55   :  { %v1256_v37 = vsub.f32 1.0, %v1255_v1 }
 0xb56   :  { %v1281_v49 = vor.u32 1.1754944e-38, %v1280_v27  ;;  %vm1279_vm14 = vcmp.eq.f32.partialorder %v1278_v15, 8.507059e+37 }
 0xb57   :  { %v1257_v12 = vmul.f32 %v2145_v24, %v1256_v37 }
 0xb59   :  { %v1258_v40 = vadd.f32 %v2145_v24, %v1257_v12 }
 0xb5a   :  { %v2147_v17 = vpop.eup %2146 }
 0xb5b   :  { %v1262_v13 = vsel %vm1261_vm9, %v2145_v24, %v1258_v40  ;;  %v1270_v22 = vmul.f32 %v2147_v17, %v1247_v34  ;;  %vm1275_vm11 = vweird.f32 %v2147_v17 }
 0xb5c   :  { %v1267_v21 = vsel %vm1264_vm10, %v1266_v43, %v1262_v13  ;;  %vm1276_vm13 = vmor %vm1274_vm12, %vm1275_vm11 }
 0xb5d   :  { %v1268_v23 = vmul.f32 %v2137_v52, %v1267_v21  ;;  %v1271_v26 = vsub.f32 1.0, %v1270_v22 }
 0xb5f   :  { %v1272_v31 = vmul.f32 %v2147_v17, %v1271_v26  ;;  %v1314_v41 = vsub.f32 %v1268_v23, %v2647_v0 }
 0xb61   :  { %v1250_v29 = vpop.xlane.xlu0 %1249  ;;  %v1273_v28 = vadd.f32 %v2147_v17, %v1272_v31  ;;  %2003 = vmatmul.msk.f32.vlgmr.msra.gmra.mxu3 %vm36_vm0, %v1314_v41  ;;  %2007 = vmatmul.msk.f32.vlgmr.msra.gmra.mxu0 %vm36_vm0, %v1314_v41 }
 0xb62   :  { %2148 = vrcp.f32 %v1250_v29  ;;  %v1295_v57 = vand.u32 2147483648, %v1250_v29  ;;  %v1293_v52 = vand.u32 2147483647, %v1250_v29  ;;  %vm1289_vm1 = vweird.f32 %v1250_v29 }
 0xb63   :  { %v1277_v20 = vsel %vm1276_vm13, %v2147_v17, %v1273_v28 }
 0xb64   :  { %v1282_v44 = vsel %vm1279_vm14, %v1281_v49, %v1277_v20  ;;  %vm1294_vm3 = vcmp.eq.f32.partialorder %v1293_v52, 8.507059e+37 }
 0xb65   :  { %v1283_v39 = vmul.f32 %v2139_v63, %v1282_v44  ;;  %v1296_v63 = vor.u32 1.1754944e-38, %v1295_v57 }
 0xb67   :  { %v1315_v54 = vsub.f32 %v1283_v39, %v2664_v30 }
 0xb68   :  { %v2149_v56 = vpop.eup %2148 }
 0xb69   :  { %v1285_v45 = vmul.f32 %v2149_v56, %v1250_v29  ;;  %v1253_v46 = vpop.xlane.xlu1 %1252  ;;  %2004 = vmatmul.msk.f32.gmra.mxu3 %vm36_vm0, %v1315_v54  ;;  %2008 = vmatmul.msk.f32.gmra.mxu0 %vm36_vm0, %v1315_v54  ;;  %vm1290_vm15 = vweird.f32 %v2149_v56 }
 0xb6a   :  { %2150 = vrcp.f32 %v1253_v46  ;;  %vm1291_vm2 = vmor %vm1289_vm1, %vm1290_vm15  ;;  %v1310_v4 = vand.u32 2147483648, %v1253_v46  ;;  %v1308_v59 = vand.u32 2147483647, %v1253_v46  ;;  %vm1304_vm5 = vweird.f32 %v1253_v46 }
 0xb6b   :  { %v1286_v47 = vsub.f32 1.0, %v1285_v45 }
 0xb6c   :  { %v1311_v24 = vor.u32 1.1754944e-38, %v1310_v4  ;;  %vm1309_vm7 = vcmp.eq.f32.partialorder %v1308_v59, 8.507059e+37 }
 0xb6d   :  { %v1287_v60 = vmul.f32 %v2149_v56, %v1286_v47 }
 0xb6f   :  { %v1288_v6 = vadd.f32 %v2149_v56, %v1287_v60 }
 0xb70   :  { %v2151_v55 = vpop.eup %2150 }
 0xb71   :  { %v1300_v11 = vmul.f32 %v2151_v55, %v1253_v46  ;;  %v1292_v32 = vsel %vm1291_vm2, %v2149_v56, %v1288_v6  ;;  %vm1305_vm4 = vweird.f32 %v2151_v55 }
 0xb72   :  { %v1297_v5 = vsel %vm1294_vm3, %v1296_v63, %v1292_v32  ;;  %vm1306_vm6 = vmor %vm1304_vm5, %vm1305_vm4 }
 0xb73   :  { %v1301_v61 = vsub.f32 1.0, %v1300_v11  ;;  %v1298_v8 = vmul.f32 %v2772_v48, %v1297_v5 }
 0xb75   :  { %v1302_v16 = vmul.f32 %v2151_v55, %v1301_v61  ;;  %v1316_v7 = vsub.f32 %v1298_v8, %v2673_v36 }
 0xb77   :  { %v1303_v10 = vadd.f32 %v2151_v55, %v1302_v16  ;;  %2005 = vmatmul.msk.f32.gmra.mxu3 %vm36_vm0, %v1316_v7  ;;  %2009 = vmatmul.msk.f32.gmra.mxu0 %vm36_vm0, %v1316_v7 }
 0xb79   :  { %v1307_v1 = vsel %vm1306_vm6, %v2151_v55, %v1303_v10 }
 0xb7a   :  { %v1312_v34 = vsel %vm1309_vm7, %v1311_v24, %v1307_v1 }
 0xb7b   :  { %v1313_v37 = vmul.f32 %v2776_v62, %v1312_v34 }
 0xb7d   :  { %v1317_v48 = vsub.f32 %v1313_v37, %v2682_v3 }
 0xb7f   :  { %2006 = vmatmul.msk.f32.gmra.mxu3 %vm36_vm0, %v1317_v48  ;;  %2010 = vmatmul.msk.f32.gmra.mxu0 %vm36_vm0, %v1317_v48 }
 0xbe4   :  { %v1347_v9 = vpop.f32.mrf.mxu3 }
 0xbe5   :  { %v2795_v12 = vsub.f32 %v2747_v33, %v1347_v9 }
 0xbe7   :  { %v1400_v38 = vsel %vm36_vm0, %v2795_v12, -inf }
 0xbe8   :  { %1401 = vmax.xlane.f32.xlu2 %v1400_v38 }
 0xbec   :  { %v1350_v40 = vpop.f32.mrf.mxu3 }
 0xbed   :  { %v2800_v17 = vsub.f32 %v2752_v42, %v1350_v40 }
 0xbef   :  { %v1403_v62 = vsel %vm36_vm0, %v2800_v17, -inf }
 0xbf0   :  { %1404 = vmax.xlane.f32.xlu0 %v1403_v62 }
 0xbfa   :  { %v1353_v43 = vpop.f32.mrf.mxu3 }
 0xbfb   :  { %v2805_v13 = vsub.f32 %v2757_v35, %v1353_v43 }
 0xbfd   :  { %v1406_v33 = vsel %vm36_vm0, %v2805_v13, -inf }
 0xbfe   :  { %1407 = vmax.xlane.f32.xlu1 %v1406_v33 }
 0xc02   :  { %v1356_v22 = vpop.f32.mrf.mxu3 }
 0xc03   :  { %v2810_v21 = vsub.f32 %v2762_v18, %v1356_v22 }
 0xc05   :  { %v1409_v42 = vsel %vm36_vm0, %v2810_v21, -inf }
 0xc06   :  { %1410 = vmax.xlane.f32.xlu2 %v1409_v42 }
 0xc5b   :  { %v1402_v23 = vpop.xlane.xlu2 %1401 }
 0xc5c   :  { %v1412_v26 = vsub.f32 %v2795_v12, %v1402_v23 }
 0xc5e   :  { %v1416_v27 = vmul.f32 1.442695, %v1412_v26 }
 0xc60   :  { %2152 = vpow2.f32 %v1416_v27 }
 0xc63   :  { %v1405_v31 = vpop.xlane.xlu0 %1404 }
 0xc64   :  { %v1413_v35 = vsub.f32 %v2800_v17, %v1405_v31 }
 0xc66   :  { %v2153_v15 = vpop.eup %2152  ;;  %v1418_v41 = vmul.f32 1.442695, %v1413_v35 }
 0xc67   :  { %v1424_v29 = vsel %vm36_vm0, %v2153_v15, 0.0 }
 0xc68   :  { %2154 = vpow2.f32 %v1418_v41  ;;  %1425 = vadd.xlane.f32.xlu0 %v1424_v29 }
 0xc6e   :  { %v2155_v18 = vpop.eup %2154 }
 0xc6f   :  { %v1427_v28 = vsel %vm36_vm0, %v2155_v18, 0.0 }
 0xc70   :  { %1428 = vadd.xlane.f32.xlu1 %v1427_v28 }
 0xc71   :  { %v1408_v49 = vpop.xlane.xlu1 %1407 }
 0xc72   :  { %v1414_v20 = vsub.f32 %v2805_v13, %v1408_v49 }
 0xc74   :  { %v1420_v44 = vmul.f32 1.442695, %v1414_v20 }
 0xc76   :  { %2156 = vpow2.f32 %v1420_v44 }
 0xc79   :  { %v1411_v39 = vpop.xlane.xlu2 %1410 }
 0xc7a   :  { %v1415_v56 = vsub.f32 %v2810_v21, %v1411_v39 }
 0xc7c   :  { %v2820_v54 = vpop.eup %2156  ;;  %v1422_v45 = vmul.f32 1.442695, %v1415_v56 }
 0xc7d   :  { %v1430_v46 = vsel %vm36_vm0, %v2820_v54, 0.0 }
 0xc7e   :  { %2158 = vpow2.f32 %v1422_v45  ;;  %1431 = vadd.xlane.f32.xlu2 %v1430_v46 }
 0xc84   :  { %v2824_v47 = vpop.eup %2158 }
 0xc85   :  { %v1433_v57 = vsel %vm36_vm0, %v2824_v47, 0.0 }
 0xc86   :  { %1434 = vadd.xlane.f32.xlu0 %v1433_v57 }
 0xcdb   :  { %v1426_v60 = vpop.xlane.xlu0 %1425 }
 0xcdc   :  { %2160 = vrcp.f32 %v1426_v60  ;;  %v1447_v11 = vand.u32 2147483648, %v1426_v60  ;;  %v1445_v5 = vand.u32 2147483647, %v1426_v60  ;;  %vm1441_vm9 = vweird.f32 %v1426_v60 }
 0xcde   :  { %v1448_v4 = vor.u32 1.1754944e-38, %v1447_v11  ;;  %vm1446_vm11 = vcmp.eq.f32.partialorder %v1445_v5, 8.507059e+37 }
 0xce2   :  { %v2161_v52 = vpop.eup %2160 }
 0xce3   :  { %v1437_v6 = vmul.f32 %v2161_v52, %v1426_v60  ;;  %v1429_v55 = vpop.xlane.xlu1 %1428  ;;  %vm1442_vm8 = vweird.f32 %v2161_v52 }
 0xce4   :  { %2162 = vrcp.f32 %v1429_v55  ;;  %vm1443_vm10 = vmor %vm1441_vm9, %vm1442_vm8  ;;  %v1462_v1 = vand.u32 2147483648, %v1429_v55  ;;  %v1460_v37 = vand.u32 2147483647, %v1429_v55  ;;  %vm1456_vm13 = vweird.f32 %v1429_v55 }
 0xce5   :  { %v1438_v63 = vsub.f32 1.0, %v1437_v6 }
 0xce6   :  { %v1463_v40 = vor.u32 1.1754944e-38, %v1462_v1  ;;  %vm1461_vm15 = vcmp.eq.f32.partialorder %v1460_v37, 8.507059e+37 }
 0xce7   :  { %v1439_v32 = vmul.f32 %v2161_v52, %v1438_v63 }
 0xce9   :  { %v1440_v61 = vadd.f32 %v2161_v52, %v1439_v32 }
 0xcea   :  { %v2163_v8 = vpop.eup %2162 }
 0xceb   :  { %v1444_v16 = vsel %vm1443_vm10, %v2161_v52, %v1440_v61  ;;  %v1452_v59 = vmul.f32 %v2163_v8, %v1429_v55  ;;  %vm1457_vm12 = vweird.f32 %v2163_v8 }
 0xcec   :  { %v1449_v7 = vsel %vm1446_vm11, %v1448_v4, %v1444_v16  ;;  %vm1458_vm14 = vmor %vm1456_vm13, %vm1457_vm12 }
 0xced   :  { %v1450_v10 = vmul.f32 %v2153_v15, %v1449_v7  ;;  %v1453_v24 = vsub.f32 1.0, %v1452_v59 }
 0xcef   :  { %v1454_v34 = vmul.f32 %v2163_v8, %v1453_v24  ;;  %v1496_v48 = vsub.f32 %v1450_v10, %v2647_v0 }
 0xcf1   :  { %v1432_v9 = vpop.xlane.xlu2 %1431  ;;  %v1455_v38 = vadd.f32 %v2163_v8, %v1454_v34  ;;  %2011 = vmatmul.msk.f32.vlgmr.msrb.gmra.mxu1 %vm36_vm0, %v1496_v48  ;;  %2015 = vmatmul.msk.f32.vlgmr.msrb.gmra.mxu2 %vm36_vm0, %v1496_v48 }
 0xcf2   :  { %2164 = vrcp.f32 %v1432_v9  ;;  %v1477_v31 = vand.u32 2147483648, %v1432_v9  ;;  %v1475_v15 = vand.u32 2147483647, %v1432_v9  ;;  %vm1471_vm2 = vweird.f32 %v1432_v9 }
 0xcf3   :  { %v1459_v62 = vsel %vm1458_vm14, %v2163_v8, %v1455_v38 }
 0xcf4   :  { %v1464_v43 = vsel %vm1461_vm15, %v1463_v40, %v1459_v62  ;;  %vm1476_vm4 = vcmp.eq.f32.partialorder %v1475_v15, 8.507059e+37 }
 0xcf5   :  { %v1465_v33 = vmul.f32 %v2155_v18, %v1464_v43  ;;  %v1478_v18 = vor.u32 1.1754944e-38, %v1477_v31 }
 0xcf7   :  { %v1497_v42 = vsub.f32 %v1465_v33, %v2664_v30 }
 0xcf8   :  { %v2165_v22 = vpop.eup %2164 }
 0xcf9   :  { %v1467_v23 = vmul.f32 %v2165_v22, %v1432_v9  ;;  %v1435_v26 = vpop.xlane.xlu0 %1434  ;;  %2012 = vmatmul.msk.f32.gmra.mxu1 %vm36_vm0, %v1497_v42  ;;  %2016 = vmatmul.msk.f32.gmra.mxu2 %vm36_vm0, %v1497_v42  ;;  %vm1472_vm1 = vweird.f32 %v2165_v22 }
 0xcfa   :  { %2166 = vrcp.f32 %v1435_v26  ;;  %vm1473_vm3 = vmor %vm1471_vm2, %vm1472_vm1  ;;  %v1492_v56 = vand.u32 2147483648, %v1435_v26  ;;  %v1490_v46 = vand.u32 2147483647, %v1435_v26  ;;  %vm1486_vm6 = vweird.f32 %v1435_v26 }
 0xcfb   :  { %v1468_v27 = vsub.f32 1.0, %v1467_v23 }
 0xcfc   :  { %v1493_v52 = vor.u32 1.1754944e-38, %v1492_v56  ;;  %vm1491_vm8 = vcmp.eq.f32.partialorder %v1490_v46, 8.507059e+37 }
 0xcfd   :  { %v1469_v35 = vmul.f32 %v2165_v22, %v1468_v27 }
 0xcff   :  { %v1470_v41 = vadd.f32 %v2165_v22, %v1469_v35 }
 0xd00   :  { %v2167_v29 = vpop.eup %2166 }
 0xd01   :  { %v1482_v28 = vmul.f32 %v2167_v29, %v1435_v26  ;;  %v1474_v49 = vsel %vm1473_vm3, %v2165_v22, %v1470_v41  ;;  %vm1487_vm5 = vweird.f32 %v2167_v29 }
 0xd02   :  { %v1479_v20 = vsel %vm1476_vm4, %v1478_v18, %v1474_v49  ;;  %vm1488_vm7 = vmor %vm1486_vm6, %vm1487_vm5 }
 0xd03   :  { %v1483_v44 = vsub.f32 1.0, %v1482_v28  ;;  %v1480_v39 = vmul.f32 %v2820_v54, %v1479_v20 }
 0xd05   :  { %v1484_v45 = vmul.f32 %v2167_v29, %v1483_v44  ;;  %v1498_v57 = vsub.f32 %v1480_v39, %v2673_v36 }
 0xd07   :  { %v1485_v60 = vadd.f32 %v2167_v29, %v1484_v45  ;;  %2013 = vmatmul.msk.f32.gmra.mxu1 %vm36_vm0, %v1498_v57  ;;  %2017 = vmatmul.msk.f32.gmra.mxu2 %vm36_vm0, %v1498_v57 }
 0xd09   :  { %v1489_v6 = vsel %vm1488_vm7, %v2167_v29, %v1485_v60 }
 0xd0a   :  { %v1494_v55 = vsel %vm1491_vm8, %v1493_v52, %v1489_v6 }
 0xd0b   :  { %v1495_v63 = vmul.f32 %v2824_v47, %v1494_v55 }
 0xd0d   :  { %v1499_v54 = vsub.f32 %v1495_v63, %v2682_v3 }
 0xd0f   :  { %2014 = vmatmul.msk.f32.gmra.mxu1 %vm36_vm0, %v1499_v54  ;;  %2018 = vmatmul.msk.f32.gmra.mxu2 %vm36_vm0, %v1499_v54 }
 0xd6e   :  { %v1529_v11 = vpop.f32.mrf.mxu1 }
 0xd6f   :  { %v2843_v32 = vsub.f32 %v2795_v12, %v1529_v11 }
 0xd71   :  { %v1582_v5 = vsel %vm36_vm0, %v2843_v32, -inf }
 0xd72   :  { %1583 = vmax.xlane.f32.xlu1 %v1582_v5 }
 0xd76   :  { %v1532_v61 = vpop.f32.mrf.mxu1 }
 0xd77   :  { %v2848_v8 = vsub.f32 %v2800_v17, %v1532_v61 }
 0xd79   :  { %v1585_v47 = vsel %vm36_vm0, %v2848_v8, -inf }
 0xd7a   :  { %1586 = vmax.xlane.f32.xlu2 %v1585_v47 }
 0xd84   :  { %v1535_v4 = vpop.f32.mrf.mxu1 }
 0xd85   :  { %v2853_v16 = vsub.f32 %v2805_v13, %v1535_v4 }
 0xd87   :  { %v1588_v12 = vsel %vm36_vm0, %v2853_v16, -inf }
 0xd88   :  { %1589 = vmax.xlane.f32.xlu0 %v1588_v12 }
 0xd8c   :  { %v1538_v59 = vpop.f32.mrf.mxu1 }
 0xd8d   :  { %v2858_v7 = vsub.f32 %v2810_v21, %v1538_v59 }
 0xd8f   :  { %v1591_v17 = vsel %vm36_vm0, %v2858_v7, -inf }
 0xd90   :  { %1592 = vmax.xlane.f32.xlu1 %v1591_v17 }
 0xde5   :  { %v1584_v10 = vpop.xlane.xlu1 %1583 }
 0xde6   :  { %v1594_v24 = vsub.f32 %v2843_v32, %v1584_v10 }
 0xde8   :  { %v1598_v1 = vmul.f32 1.442695, %v1594_v24 }
 0xdea   :  { %2168 = vpow2.f32 %v1598_v1 }
 0xded   :  { %v1587_v34 = vpop.xlane.xlu2 %1586 }
 0xdee   :  { %v1595_v13 = vsub.f32 %v2848_v8, %v1587_v34 }
 0xdf0   :  { %v2169_v37 = vpop.eup %2168  ;;  %v1600_v48 = vmul.f32 1.442695, %v1595_v13 }
 0xdf1   :  { %v1606_v9 = vsel %vm36_vm0, %v2169_v37, 0.0 }
 0xdf2   :  { %2170 = vpow2.f32 %v1600_v48  ;;  %1607 = vadd.xlane.f32.xlu2 %v1606_v9 }
 0xdf8   :  { %v2171_v21 = vpop.eup %2170 }
 0xdf9   :  { %v1609_v38 = vsel %vm36_vm0, %v2171_v21, 0.0 }
 0xdfa   :  { %1610 = vadd.xlane.f32.xlu0 %v1609_v38 }
 0xdfb   :  { %v1590_v40 = vpop.xlane.xlu0 %1589 }
 0xdfc   :  { %v1596_v62 = vsub.f32 %v2853_v16, %v1590_v40 }
 0xdfe   :  { %v1602_v43 = vmul.f32 1.442695, %v1596_v62 }
 0xe00   :  { %2172 = vpow2.f32 %v1602_v43 }
 0xe03   :  { %v1593_v33 = vpop.xlane.xlu1 %1592 }
 0xe04   :  { %v1597_v22 = vsub.f32 %v2858_v7, %v1593_v33 }
 0xe06   :  { %v2868_v42 = vpop.eup %2172  ;;  %v1604_v23 = vmul.f32 1.442695, %v1597_v22 }
 0xe07   :  { %v1612_v26 = vsel %vm36_vm0, %v2868_v42, 0.0 }
 0xe08   :  { %2174 = vpow2.f32 %v1604_v23  ;;  %1613 = vadd.xlane.f32.xlu1 %v1612_v26 }
 0xe0e   :  { %v2872_v27 = vpop.eup %2174 }
 0xe0f   :  { %v1615_v31 = vsel %vm36_vm0, %v2872_v27, 0.0 }
 0xe10   :  { %1616 = vadd.xlane.f32.xlu2 %v1615_v31 }
 0xe65   :  { %v1608_v35 = vpop.xlane.xlu2 %1607 }
 0xe66   :  { %2176 = vrcp.f32 %v1608_v35  ;;  %v1629_v28 = vand.u32 2147483648, %v1608_v35  ;;  %v1627_v20 = vand.u32 2147483647, %v1608_v35  ;;  %vm1623_vm10 = vweird.f32 %v1608_v35 }
 0xe68   :  { %v1630_v56 = vor.u32 1.1754944e-38, %v1629_v28  ;;  %vm1628_vm12 = vcmp.eq.f32.partialorder %v1627_v20, 8.507059e+37 }
 0xe6c   :  { %v2177_v15 = vpop.eup %2176 }
 0xe6d   :  { %v1619_v41 = vmul.f32 %v2177_v15, %v1608_v35  ;;  %v1611_v29 = vpop.xlane.xlu0 %1610  ;;  %vm1624_vm9 = vweird.f32 %v2177_v15 }
 0xe6e   :  { %2178 = vrcp.f32 %v1611_v29  ;;  %vm1625_vm11 = vmor %vm1623_vm10, %vm1624_vm9  ;;  %v1644_v6 = vand.u32 2147483648, %v1611_v29  ;;  %v1642_v63 = vand.u32 2147483647, %v1611_v29  ;;  %vm1638_vm14 = vweird.f32 %v1611_v29 }
 0xe6f   :  { %v1620_v18 = vsub.f32 1.0, %v1619_v41 }
 0xe70   :  { %v1645_v61 = vor.u32 1.1754944e-38, %v1644_v6  ;;  %vm1643_vm1 = vcmp.eq.f32.partialorder %v1642_v63, 8.507059e+37 }
 0xe71   :  { %v1621_v49 = vmul.f32 %v2177_v15, %v1620_v18 }
 0xe73   :  { %v1622_v44 = vadd.f32 %v2177_v15, %v1621_v49 }
 0xe74   :  { %v2179_v39 = vpop.eup %2178 }
 0xe75   :  { %v1626_v45 = vsel %vm1625_vm11, %v2177_v15, %v1622_v44  ;;  %v1634_v46 = vmul.f32 %v2179_v39, %v1611_v29  ;;  %vm1639_vm13 = vweird.f32 %v2179_v39 }
 0xe76   :  { %v1631_v57 = vsel %vm1628_vm12, %v1630_v56, %v1626_v45  ;;  %vm1640_vm15 = vmor %vm1638_vm14, %vm1639_vm13 }
 0xe77   :  { %v1632_v60 = vmul.f32 %v2169_v37, %v1631_v57  ;;  %v1635_v52 = vsub.f32 1.0, %v1634_v46 }
 0xe79   :  { %v1636_v55 = vmul.f32 %v2179_v39, %v1635_v52  ;;  %v1678_v54 = vsub.f32 %v1632_v60, %v2647_v0 }
 0xe7b   :  { %v1614_v11 = vpop.xlane.xlu1 %1613  ;;  %v1637_v5 = vadd.f32 %v2179_v39, %v1636_v55  ;;  %2019 = vmatmul.msk.f32.vlgmr.msrb.gmra.mxu3 %vm36_vm0, %v1678_v54  ;;  %2023 = vmatmul.msk.f32.vlgmr.msrb.gmra.mxu0 %vm36_vm0, %v1678_v54 }
 0xe7c   :  { %2180 = vrcp.f32 %v1614_v11  ;;  %v1659_v1 = vand.u32 2147483648, %v1614_v11  ;;  %v1657_v13 = vand.u32 2147483647, %v1614_v11  ;;  %vm1653_vm3 = vweird.f32 %v1614_v11 }
 0xe7d   :  { %v1641_v47 = vsel %vm1640_vm15, %v2179_v39, %v1637_v5 }
 0xe7e   :  { %v1646_v4 = vsel %vm1643_vm1, %v1645_v61, %v1641_v47  ;;  %v1660_v9 = vor.u32 1.1754944e-38, %v1659_v1  ;;  %vm1658_vm5 = vcmp.eq.f32.partialorder %v1657_v13, 8.507059e+37 }
 0xe7f   :  { %v1647_v12 = vmul.f32 %v2171_v21, %v1646_v4 }
 0xe81   :  { %v1679_v17 = vsub.f32 %v1647_v12, %v2664_v30 }
 0xe82   :  { %v2181_v59 = vpop.eup %2180 }
 0xe83   :  { %v1649_v10 = vmul.f32 %v2181_v59, %v1614_v11  ;;  %v1617_v24 = vpop.xlane.xlu2 %1616  ;;  %2020 = vmatmul.msk.f32.gmra.mxu3 %vm36_vm0, %v1679_v17  ;;  %2024 = vmatmul.msk.f32.gmra.mxu0 %vm36_vm0, %v1679_v17  ;;  %vm1654_vm2 = vweird.f32 %v2181_v59 }
 0xe84   :  { %2182 = vrcp.f32 %v1617_v24  ;;  %vm1655_vm4 = vmor %vm1653_vm3, %vm1654_vm2  ;;  %v1674_v43 = vand.u32 2147483648, %v1617_v24  ;;  %v1672_v22 = vand.u32 2147483647, %v1617_v24  ;;  %vm1668_vm7 = vweird.f32 %v1617_v24 }
 0xe85   :  { %v1650_v0 = vsub.f32 1.0, %v1649_v10 }
 0xe86   :  { %v1675_v31 = vor.u32 1.1754944e-38, %v1674_v43  ;;  %vm1673_vm9 = vcmp.eq.f32.partialorder %v1672_v22, 8.507059e+37 }
 0xe87   :  { %v1651_v34 = vmul.f32 %v2181_v59, %v1650_v0 }
 0xe89   :  { %v1652_v37 = vadd.f32 %v2181_v59, %v1651_v34 }
 0xe8a   :  { %v2183_v48 = vpop.eup %2182 }
 0xe8b   :  { %v1664_v21 = vmul.f32 %v2183_v48, %v1617_v24  ;;  %v1656_v30 = vsel %vm1655_vm4, %v2181_v59, %v1652_v37  ;;  %vm1669_vm6 = vweird.f32 %v2183_v48 }
 0xe8c   :  { %v1661_v38 = vsel %vm1658_vm5, %v1660_v9, %v1656_v30  ;;  %vm1670_vm8 = vmor %vm1668_vm7, %vm1669_vm6 }
 0xe8d   :  { %v1665_v40 = vsub.f32 1.0, %v1664_v21  ;;  %v1662_v62 = vmul.f32 %v2868_v42, %v1661_v38 }
 0xe8f   :  { %v1666_v33 = vmul.f32 %v2183_v48, %v1665_v40  ;;  %v1680_v23 = vsub.f32 %v1662_v62, %v2673_v36 }
 0xe91   :  { %v1667_v26 = vadd.f32 %v2183_v48, %v1666_v33  ;;  %2021 = vmatmul.msk.f32.gmra.mxu3 %vm36_vm0, %v1680_v23  ;;  %2025 = vmatmul.msk.f32.gmra.mxu0 %vm36_vm0, %v1680_v23 }
 0xe93   :  { %v1671_v35 = vsel %vm1670_vm8, %v2183_v48, %v1667_v26 }
 0xe94   :  { %v1676_v15 = vsel %vm1673_vm9, %v1675_v31, %v1671_v35  ;;  %v2206_v31 = vld [vmem:[%s2944_s7] sm:$0xff] }
 0xe95   :  { %v1677_v41 = vmul.f32 %v2872_v27, %v1676_v15 }
 0xe97   :  { %v1681_v42 = vsub.f32 %v1677_v41, %v2682_v3 }
 0xe99   :  { %2022 = vmatmul.msk.f32.gmra.mxu3 %vm36_vm0, %v1681_v42  ;;  %2026 = vmatmul.msk.f32.gmra.mxu0 %vm36_vm0, %v1681_v42 }
 0xefe   :  { %v1711_v36 = vpop.f32.mrf.mxu3 }
 0xeff   :  { %v1752_v29 = vsub.f32 %v2843_v32, %v1711_v36 }
 0xf01   :  { %v1764_v18 = vsel %vm36_vm0, %v1752_v29, -inf }
 0xf02   :  { %1765 = vmax.xlane.f32.xlu0 %v1764_v18 }
 0xf06   :  { %v1714_v28 = vpop.f32.mrf.mxu3 }
 0xf07   :  { %v1753_v49 = vsub.f32 %v2848_v8, %v1714_v28 }
 0xf09   :  { %v1767_v20 = vsel %vm36_vm0, %v1753_v49, -inf }
 0xf0a   :  { %1768 = vmax.xlane.f32.xlu1 %v1767_v20 }
 0xf14   :  { %v1717_v44 = vpop.f32.mrf.mxu3 }
 0xf15   :  { %v1754_v27 = vsub.f32 %v2853_v16, %v1717_v44 }
 0xf17   :  { %v1770_v3 = vsel %vm36_vm0, %v1754_v27, -inf }
 0xf18   :  { %1771 = vmax.xlane.f32.xlu2 %v1770_v3 }
 0xf1c   :  { %v1720_v39 = vpop.f32.mrf.mxu3 }
 0xf1d   :  { %v1755_v56 = vsub.f32 %v2858_v7, %v1720_v39 }
 0xf1f   :  { %v1773_v32 = vsel %vm36_vm0, %v1755_v56, -inf }
 0xf20   :  { %1774 = vmax.xlane.f32.xlu0 %v1773_v32 }
 0xf75   :  { %v1766_v45 = vpop.xlane.xlu0 %1765 }
 0xf76   :  { %v1776_v46 = vsub.f32 %v1752_v29, %v1766_v45 }
 0xf78   :  { %v1780_v57 = vmul.f32 1.442695, %v1776_v46 }
 0xf7a   :  { %2184 = vpow2.f32 %v1780_v57 }
 0xf7d   :  { %v1769_v8 = vpop.xlane.xlu1 %1768 }
 0xf7e   :  { %v1777_v60 = vsub.f32 %v1753_v49, %v1769_v8  ;;  %v2207_v49 = vld [vmem:[%s2944_s7 + $0x8] sm:$0xff] }
 0xf80   :  { %v2185_v52 = vpop.eup %2184  ;;  %v1782_v6 = vmul.f32 1.442695, %v1777_v60 }
 0xf81   :  { %v1788_v55 = vsel %vm36_vm0, %v2185_v52, 0.0 }
 0xf82   :  { %2186 = vpow2.f32 %v1782_v6  ;;  %1789 = vadd.xlane.f32.xlu1 %v1788_v55 }
 0xf88   :  { %v2187_v16 = vpop.eup %2186 }
 0xf89   :  { %v1791_v63 = vsel %vm36_vm0, %v2187_v16, 0.0 }
 0xf8a   :  { %1792 = vadd.xlane.f32.xlu2 %v1791_v63 }
 0xf8b   :  { %v1772_v7 = vpop.xlane.xlu2 %1771 }
 0xf8c   :  { %v1778_v54 = vsub.f32 %v1754_v27, %v1772_v7 }
 0xf8e   :  { %v1784_v11 = vmul.f32 1.442695, %v1778_v54  ;;  %v2208_v54 = vld [vmem:[%s2944_s7 + $0x10] sm:$0xff] }
 0xf90   :  { %2188 = vpow2.f32 %v1784_v11 }
 0xf93   :  { %v1775_v5 = vpop.xlane.xlu0 %1774 }
 0xf94   :  { %v1779_v61 = vsub.f32 %v1755_v56, %v1775_v5 }
 0xf96   :  { %v2900_v47 = vpop.eup %2188  ;;  %v1786_v4 = vmul.f32 1.442695, %v1779_v61 }
 0xf97   :  { %v1794_v12 = vsel %vm36_vm0, %v2900_v47, 0.0 }
 0xf98   :  { %2190 = vpow2.f32 %v1786_v4  ;;  %1795 = vadd.xlane.f32.xlu0 %v1794_v12 }
 0xf9e   :  { %v2904_v59 = vpop.eup %2190 }
 0xf9f   :  { %v1797_v17 = vsel %vm36_vm0, %v2904_v59, 0.0 }
 0xfa0   :  { %1798 = vadd.xlane.f32.xlu1 %v1797_v17  ;;  %v2209_v17 = vld [vmem:[%s2944_s7 + $0x18] sm:$0xff] }
 0xff5   :  { %v1790_v10 = vpop.xlane.xlu1 %1789 }
 0xff6   :  { %2192 = vrcp.f32 %v1790_v10  ;;  %v1811_v13 = vand.u32 2147483648, %v1790_v10  ;;  %v1809_v48 = vand.u32 2147483647, %v1790_v10  ;;  %vm1805_vm11 = vweird.f32 %v1790_v10 }
 0xff8   :  { %v1812_v30 = vor.u32 1.1754944e-38, %v1811_v13  ;;  %vm1810_vm13 = vcmp.eq.f32.partialorder %v1809_v48, 8.507059e+37 }
 0xffc   :  { %v2193_v24 = vpop.eup %2192 }
 0xffd   :  { %v1801_v0 = vmul.f32 %v2193_v24, %v1790_v10  ;;  %v1793_v1 = vpop.xlane.xlu2 %1792  ;;  %vm1806_vm10 = vweird.f32 %v2193_v24 }
 0xffe   :  { %2194 = vrcp.f32 %v1793_v1  ;;  %vm1807_vm12 = vmor %vm1805_vm11, %vm1806_vm10  ;;  %v1826_v22 = vand.u32 2147483648, %v1793_v1  ;;  %v1824_v26 = vand.u32 2147483647, %v1793_v1  ;;  %vm1820_vm15 = vweird.f32 %v1793_v1 }
 0xfff   :  { %v1802_v34 = vsub.f32 1.0, %v1801_v0  ;;  %v1021_v0 = vpop.f32.mrf.mxu0 }
0x1000   :  { %v1827_v42 = vor.u32 1.1754944e-38, %v1826_v22  ;;  %vm1825_vm2 = vcmp.eq.f32.partialorder %v1824_v26, 8.507059e+37 }
0x1001   :  { %v1803_v37 = vmul.f32 %v2193_v24, %v1802_v34 }
0x1003   :  { %v1804_v9 = vadd.f32 %v2193_v24, %v1803_v37 }
0x1004   :  { %v2195_v21 = vpop.eup %2194 }
0x1005   :  { %v1808_v38 = vsel %vm1807_vm12, %v2193_v24, %v1804_v9  ;;  %v1816_v40 = vmul.f32 %v2195_v21, %v1793_v1  ;;  %vm1821_vm14 = vweird.f32 %v2195_v21  ;;  %v839_v24 = vpop.f32.mrf.mxu2 }
0x1006   :  { %v1813_v62 = vsel %vm1810_vm13, %v1812_v30, %v1808_v38  ;;  %vm1822_vm1 = vmor %vm1820_vm15, %vm1821_vm14 }
0x1007   :  { %v1814_v43 = vmul.f32 %v2185_v52, %v1813_v62  ;;  %v1817_v33 = vsub.f32 1.0, %v1816_v40  ;;  %v1376_v34 = vpop.f32.mrf.mxu0  ;;  %v1029_v62 = vand.u32 2147483647, %v2697_v53 }
0x1009   :  { %v1818_v23 = vmul.f32 %v2195_v21, %v1817_v33  ;;  %v1860_v35 = vsub.f32 %v1814_v43, %v2206_v31 }
0x100b   :  { %v1796_v15 = vpop.xlane.xlu0 %1795  ;;  %v1819_v41 = vadd.f32 %v2195_v21, %v1818_v23  ;;  %2027 = vmatmul.msk.f32.vlgmr.msra.gmra.mxu1 %vm36_vm0, %v1860_v35  ;;  %v1392_v35 = vand.u32 2147483647, %v1376_v34 }
0x100c   :  { %2196 = vrcp.f32 %v1796_v15  ;;  %v1841_v39 = vand.u32 2147483648, %v1796_v15  ;;  %v1839_v32 = vand.u32 2147483647, %v1796_v15  ;;  %vm1835_vm4 = vweird.f32 %v1796_v15 }
0x100d   :  { %v1823_v36 = vsel %vm1822_vm1, %v2195_v21, %v1819_v41  ;;  %v1194_v1 = vpop.f32.mrf.mxu2 }
0x100e   :  { %v1828_v29 = vsel %vm1825_vm2, %v1827_v42, %v1823_v36  ;;  %v1842_v57 = vor.u32 1.1754944e-38, %v1841_v39  ;;  %vm1840_vm6 = vcmp.eq.f32.partialorder %v1839_v32, 8.507059e+37  ;;  %v1210_v33 = vand.u32 2147483647, %v1194_v1 }
0x100f   :  { %v1829_v18 = vmul.f32 %v2187_v16, %v1828_v29  ;;  %v1379_v37 = vpop.f32.mrf.mxu0 }
0x1010   :  { %v1214_v42 = vadd.f32 %v1210_v33, %v2690_v51 }
0x1011   :  { %v1861_v20 = vsub.f32 %v1829_v18, %v2207_v49 }
0x1012   :  { %v2197_v28 = vpop.eup %2196 }
0x1013   :  { %v1831_v44 = vmul.f32 %v2197_v28, %v1796_v15  ;;  %v1799_v27 = vpop.xlane.xlu1 %1798  ;;  %2028 = vmatmul.msk.f32.gmra.mxu1 %vm36_vm0, %v1861_v20  ;;  %vm1836_vm3 = vweird.f32 %v2197_v28  ;;  %v1393_v15 = vand.u32 2147483647, %v1379_v37 }
0x1014   :  { %2198 = vrcp.f32 %v1799_v27  ;;  %vm1837_vm5 = vmor %vm1835_vm4, %vm1836_vm3  ;;  %v1856_v16 = vand.u32 2147483648, %v1799_v27  ;;  %v1854_v7 = vand.u32 2147483647, %v1799_v27  ;;  %vm1850_vm8 = vweird.f32 %v1799_v27 }
0x1015   :  { %v1832_v3 = vsub.f32 1.0, %v1831_v44  ;;  %v1197_v13 = vpop.f32.mrf.mxu2 }
0x1016   :  { %v1857_v61 = vor.u32 1.1754944e-38, %v1856_v16  ;;  %vm1855_vm10 = vcmp.eq.f32.partialorder %v1854_v7, 8.507059e+37  ;;  %v1211_v22 = vand.u32 2147483647, %v1197_v13 }
0x1017   :  { %v1833_v56 = vmul.f32 %v2197_v28, %v1832_v3  ;;  %v1382_v9 = vpop.f32.mrf.mxu0 }
0x1019   :  { %v1834_v45 = vadd.f32 %v2197_v28, %v1833_v56 }
0x101a   :  { %v2199_v46 = vpop.eup %2198 }
0x101b   :  { %v1846_v8 = vmul.f32 %v2199_v46, %v1799_v27  ;;  %v1838_v60 = vsel %vm1837_vm5, %v2197_v28, %v1834_v45  ;;  %vm1851_vm7 = vweird.f32 %v2199_v46  ;;  %v1396_v28 = vadd.f32 %v1392_v35, %v1214_v42 }
0x101c   :  { %v1843_v52 = vsel %vm1840_vm6, %v1842_v57, %v1838_v60  ;;  %vm1852_vm9 = vmor %vm1850_vm8, %vm1851_vm7  ;;  %v485_v57 = vand.u32 2147483647, %v2610_v2  ;;  %v303_v60 = vand.u32 2147483647, %v2537_v19 }
0x101d   :  { %v1847_v6 = vsub.f32 1.0, %v1846_v8  ;;  %v1844_v55 = vmul.f32 %v2900_v47, %v1843_v52  ;;  %v1200_v48 = vpop.f32.mrf.mxu2  ;;  %v667_v52 = vand.u32 2147483647, %v2687_v50 }
0x101f   :  { %v1848_v63 = vmul.f32 %v2199_v46, %v1847_v6  ;;  %v1862_v11 = vsub.f32 %v1844_v55, %v2208_v54  ;;  %v1385_v30 = vpop.f32.mrf.mxu0  ;;  %v489_v6 = vadd.f32 %v485_v57, %v303_v60  ;;  %v849_v55 = vand.u32 2147483647, %v839_v24 }
0x1020   :  { %v1212_v54 = vand.u32 2147483647, %v1200_v48 }
0x1021   :  { %v1849_v5 = vadd.f32 %v2199_v46, %v1848_v63  ;;  %2029 = vmatmul.msk.f32.gmra.mxu1 %vm36_vm0, %v1862_v11  ;;  %v671_v16 = vadd.f32 %v667_v52, %v489_v6  ;;  %v1031_v63 = vand.u32 2147483647, %v1021_v0 }
0x1023   :  { %v1853_v4 = vsel %vm1852_vm9, %v2199_v46, %v1849_v5  ;;  %v853_v7 = vadd.f32 %v849_v55, %v671_v16 }
0x1024   :  { %v1858_v12 = vsel %vm1855_vm10, %v1857_v61, %v1853_v4 }
0x1025   :  { %v1859_v47 = vmul.f32 %v2904_v59, %v1858_v12  ;;  %v1203_v21 = vpop.f32.mrf.mxu2  ;;  %v847_v59 = vand.u32 2147483647, %v2625_v14  ;;  %v1035_v4 = vadd.f32 %v1031_v63, %v853_v7  ;;  %v1394_v12 = vand.u32 2147483647, %v1382_v9 }
0x1026   :  { %v1213_v11 = vand.u32 2147483647, %v1203_v21 }
0x1027   :  { %v1863_v10 = vsub.f32 %v1859_v47, %v2209_v17  ;;  %v1740_v40 = vpop.f32.mrf.mxu0  ;;  %v851_v43 = vadd.f32 %v847_v59, %v2548_v25  ;;  %v1395_v47 = vand.u32 2147483647, %v1385_v30  ;;  %v1216_v17 = vadd.f32 %v1212_v54, %v2705_v58 }
0x1028   :  { %v1756_v14 = vand.u32 2147483647, %v1740_v40 }
0x1029   :  { %2030 = vmatmul.msk.f32.gmra.mxu1 %vm36_vm0, %v1863_v10  ;;  %v1033_v31 = vadd.f32 %v1029_v62, %v851_v43  ;;  %v1217_v10 = vadd.f32 %v1213_v11, %v1035_v4  ;;  %v1398_v50 = vadd.f32 %v1394_v12, %v1216_v17 }
0x102b   :  { %v1215_v36 = vadd.f32 %v1211_v22, %v1033_v31  ;;  %v1399_v34 = vadd.f32 %v1395_v47, %v1217_v10 }
0x102d   :  { %v1558_v38 = vpop.f32.mrf.mxu2  ;;  %v1397_v49 = vadd.f32 %v1393_v15, %v1215_v36 }
0x102e   :  { %v1574_v29 = vand.u32 2147483647, %v1558_v38 }
0x102f   :  { %v1743_v41 = vpop.f32.mrf.mxu0 }
0x1030   :  { %v1757_v20 = vand.u32 2147483647, %v1743_v41  ;;  %v1578_v53 = vadd.f32 %v1574_v29, %v1396_v28 }
0x1032   :  { %v1760_v3 = vadd.f32 %v1756_v14, %v1578_v53 }
0x1035   :  { %v1561_v23 = vpop.f32.mrf.mxu2 }
0x1036   :  { %v1575_v18 = vand.u32 2147483647, %v1561_v23 }
0x1037   :  { %v1746_v51 = vpop.f32.mrf.mxu0 }
0x1038   :  { %v1579_v44 = vadd.f32 %v1575_v18, %v1397_v49  ;;  %v1758_v13 = vand.u32 2147483647, %v1746_v51 }
0x103a   :  { %v1761_v39 = vadd.f32 %v1757_v20, %v1579_v44 }
0x103d   :  { %v1564_v32 = vpop.f32.mrf.mxu2 }
0x103e   :  { %v1576_v19 = vand.u32 2147483647, %v1564_v32 }
0x103f   :  { %v1749_v2 = vpop.f32.mrf.mxu0 }
0x1040   :  { %v1759_v24 = vand.u32 2147483647, %v1749_v2  ;;  %v1580_v37 = vadd.f32 %v1576_v19, %v1398_v50 }
0x1042   :  { %v1762_v21 = vadd.f32 %v1758_v13, %v1580_v37 }
0x1045   :  { %v1567_v5 = vpop.f32.mrf.mxu2 }
0x1046   :  { %v1577_v1 = vand.u32 2147483647, %v1567_v5 }
0x1048   :  { %v1581_v0 = vadd.f32 %v1577_v1, %v1399_v34 }
0x104a   :  { %v1763_v40 = vadd.f32 %v1759_v24, %v1581_v0 }
0x1088   :  { %v1893_v26 = vpop.f32.mrf.mxu1 }
0x1089   :  { %v1905_v25 = vand.u32 2147483647, %v1893_v26 }
0x108b   :  { %v1909_v45 = vadd.f32 %v1905_v25, %v1760_v3 }
0x1090   :  { %v1896_v27 = vpop.f32.mrf.mxu1 }
0x1091   :  { %v1906_v56 = vand.u32 2147483647, %v1896_v27 }
0x1093   :  { %v1910_v46 = vadd.f32 %v1906_v56, %v1761_v39 }
0x1095   :  { %v1913_v8 = vadd.f32 %v1910_v46, %v1909_v45 }
0x1097   :  { %1914 = vadd.xlane.f32.xlu2 %v1913_v8 }
0x109e   :  { %v1899_v61 = vpop.f32.mrf.mxu1 }
0x109f   :  { %v1907_v38 = vand.u32 2147483647, %v1899_v61 }
0x10a1   :  { %v1911_v62 = vadd.f32 %v1907_v38, %v1762_v21 }
0x10a6   :  { %v1902_v48 = vpop.f32.mrf.mxu1 }
0x10a7   :  { %v1908_v59 = vand.u32 2147483647, %v1902_v48 }
0x10a9   :  { %v1912_v9 = vadd.f32 %v1908_v59, %v1763_v40 }
0x10ab   :  { %v1926_v30 = vadd.f32 %v1912_v9, %v1911_v62 }
0x10ad   :  { %1927 = vadd.xlane.f32.xlu0 %v1926_v30 }
0x110a   :  { %v1915_v43 = vpop.xlane.xlu2 %1914 }
0x110b   :  { %v1916_v58 = vrot.slane %v1915_v43, 4 }
0x110d   :  { %v1917_v33 = vadd.f32 %v1916_v58, %v1915_v43 }
0x110f   :  { %v1918_v22 = vrot.slane %v1917_v33, 2 }
0x1111   :  { %v1919_v23 = vadd.f32 %v1918_v22, %v1917_v33 }
0x1113   :  { %v1920_v26 = vrot.slane %v1919_v23, 1 }
0x1115   :  { %v1921_v31 = vadd.f32 %v1920_v26, %v1919_v23 }
0x1117   :  { %2033 = vpush %v1921_v31 }
0x1120   :  { %v1928_v35 = vpop.xlane.xlu0 %1927 }
0x1121   :  { %v1929_v15 = vrot.slane %v1928_v35, 4 }
0x1123   :  { %v1930_v41 = vadd.f32 %v1929_v15, %v1928_v35 }
0x1125   :  { %v1931_v42 = vrot.slane %v1930_v41, 2 }
0x1127   :  { %v1932_v36 = vadd.f32 %v1931_v42, %v1930_v41 }
0x1129   :  { %v1933_v29 = vrot.slane %v1932_v36, 1 }
0x112b   :  { %v1934_v18 = vadd.f32 %v1933_v29, %v1932_v36 }
0x112d   :  { %2035 = vpush %v1934_v18 }
0x1148   :  { %s2034_s7 = spop %2033 }
0x1149   :  { %s1923_s26 = smul.f32 4.882813e-07, %s2034_s7 }
0x114b   :  { %1925 = sst [smem:[#allocation2]] %s1923_s26 }
0x115e   :  { %s2036_s30 = spop %2035 }
0x115f   :  { %s1936_s9 = smul.f32 4.882813e-07, %s2036_s30 }
0x1161   :  { %1938 = sst [smem:[#allocation2 + $0x1]] %s1936_s9 }
0x1162   :  { %1947 = dma.smem_to_hbm %s2224_s10, 16, %s1945_s29, [#allocation3]  }
0x1163   :  { %2222 = dma.done.wait [#allocation3], 16  }
0x1164   :  { %2223 = vsyncadd [#allocation3], 4294967280 }
0x1165   :  { %1952 = sfence }
0x1166   :  { %1953 = vsyncpa [#allocation3], 1 }

</bundles_post_ra>
